<compile_context>
chip_gen: v5e
topology: v5e:2x2
jax: 0.10.0
libtpu: 0.0.40
codegen_flags: <defaults>
</compile_context>

<pallas_src>
import functools

import jax
import jax.numpy as jnp
from jax import lax
from jax.experimental import pallas as pl
from jax.experimental.pallas import tpu as pltpu


# --------------------------------------------------------------------------- #
# Kernel
# --------------------------------------------------------------------------- #
def _bneck_kernel(x_ref, w1_ref, bn1b_ref, wdw_ref, bn2b_ref,
                  wfc1_ref, wfc2_ref, w3_ref, bn3b_ref,
                  out_ref, pad_ref,
                  *, H, W, k, stride, use_se, add_residual):
    p = k // 2
    Hp, Wp = H + 2 * p, W + 2 * p
    Ep = pad_ref.shape[-1]                       # expanded (lane-padded) channels

    x2d = x_ref[0]                               # (H*W, Cin_p) f32

    # ---- 1x1 expand conv (MXU, bf16 in / f32 acc) + folded-BN bias + ReLU ----
    h1 = jnp.dot(x2d.astype(jnp.bfloat16), w1_ref[...],
                 preferred_element_type=jnp.float32)           # (H*W, Ep)
    h1 = jnp.maximum(h1 + bn1b_ref[...], 0.0)

    # ---- refresh only the thin zero halo of the persistent pad scratch ----
    # NOTE: not guarded by pl.when(program_id == 0): the batch axis is marked
    # "parallel" (megacore on v7x), so step 0 is not guaranteed to run on every
    # core.  The frame is tiny (4 strips) vs. re-zeroing the whole buffer.
    zrow = jnp.zeros((p, Wp, Ep), jnp.float32)
    zcol = jnp.zeros((H, p, Ep), jnp.float32)
    pad_ref[pl.ds(0, p), :, :] = zrow
    pad_ref[pl.ds(Hp - p, p), :, :] = zrow
    pad_ref[pl.ds(p, H), pl.ds(0, p), :] = zcol
    pad_ref[pl.ds(p, H), pl.ds(Wp - p, p), :] = zcol

    # expand output goes straight into the padded interior (tile-aligned reshape)
    pad_ref[pl.ds(p, H), pl.ds(p, W), :] = h1.reshape(H, W, Ep)

    # ---- kxk depthwise conv (VPU); BN2 scale is pre-folded into wdw ----
    wdw = wdw_ref[...]                           # (k*k, Ep) f32, loaded once
    acc = jnp.zeros((H, W, Ep), jnp.float32)
    for dy in range(k):                          # static, k*k taps
        for dx in range(k):
            i = dy * k + dx
            tap = pad_ref[pl.ds(dy, H), pl.ds(dx, W), :]        # (H, W, Ep)
            acc = acc + tap * wdw[i:i + 1, :].reshape(1, 1, Ep)
    if stride > 1:
        # TODO(synk): stride > 1 subsamples a full stride-1 result (correct but
        # wasteful); not exercised by the demo below.
        acc = lax.slice(acc, (0, 0, 0), (H, W, Ep), (stride, stride, 1))
    Ho, Wo = acc.shape[0], acc.shape[1]

    h2 = jnp.maximum(acc + bn2b_ref[...].reshape(1, 1, Ep), 0.0)
    h2 = h2.reshape(Ho * Wo, Ep)

    # ---- Squeeze-and-Excite ----
    if use_se:
        f = jnp.mean(h2, axis=0, keepdims=True)                 # (1, Ep) f32
        f = jnp.maximum(jnp.dot(f.astype(jnp.bfloat16), wfc1_ref[...],
                                preferred_element_type=jnp.float32), 0.0)
        f = jnp.dot(f.astype(jnp.bfloat16), wfc2_ref[...],
                    preferred_element_type=jnp.float32)         # (1, Ep)
        f = jnp.clip((f + 3.0) / 6.0, 0.0, 1.0)                 # hardsigmoid
        h2 = h2 * f

    # ---- 1x1 projection conv (MXU) + folded-BN bias (Identity activation) ----
    h3 = jnp.dot(h2.astype(jnp.bfloat16), w3_ref[...],
                 preferred_element_type=jnp.float32)            # (Ho*Wo, Cout_p)
    h3 = h3 + bn3b_ref[...]

    if add_residual:
        h3 = h3 + x2d                # f32 residual; Cin_p == Cout_p here

    out_ref[0] = h3


# --------------------------------------------------------------------------- #
# Host-side parameter prep (fold BN scales, pad channels to 128 lanes, bf16)
# --------------------------------------------------------------------------- #
def _round_up(n, m=128):
    return ((n + m - 1) // m) * m


def _pad2d(a, rows, cols):
    return jnp.pad(a, ((0, rows - a.shape[0]), (0, cols - a.shape[1])))


def prepare_params(raw, *, kernel_size):
    k = kernel_size
    Cin, E = raw["w1"].shape
    Cout = raw["w3"].shape[1]
    r = raw["wfc1"].shape[1]
    Cin_p, E_p, Cout_p, R_p = (_round_up(c) for c in (Cin, E, Cout, r))

    w1 = raw["w1"] * raw["bn1s"][None, :]                           # fold BN1 scale
    wdw = (raw["wdw"] * raw["bn2s"][None, None, :]).reshape(k * k, E)  # fold BN2 scale
    w3 = raw["w3"] * raw["bn3s"][None, :]                           # fold BN3 scale

    return {
        "in_ch": Cin, "out_ch": Cout,
        "w1":   _pad2d(w1, Cin_p, E_p).astype(jnp.bfloat16),
        "bn1b": _pad2d(raw["bn1b"][None, :], 1, E_p).astype(jnp.float32),
        "wdw":  _pad2d(wdw, k * k, E_p).astype(jnp.float32),
        "bn2b": _pad2d(raw["bn2b"][None, :], 1, E_p).astype(jnp.float32),
        "wfc1": _pad2d(raw["wfc1"], E_p, R_p).astype(jnp.bfloat16),
        "wfc2": _pad2d(raw["wfc2"], R_p, E_p).astype(jnp.bfloat16),
        "w3":   _pad2d(w3, E_p, Cout_p).astype(jnp.bfloat16),
        "bn3b": _pad2d(raw["bn3b"][None, :], 1, Cout_p).astype(jnp.float32),
    }


# --------------------------------------------------------------------------- #
# Wrapper
# --------------------------------------------------------------------------- #
def bneck_forward(x, prep, *, kernel_size, stride, se):
    N, H, W, Cin = x.shape
    Cout = prep["out_ch"]
    Cin_p, E_p = prep["w1"].shape
    Cout_p = prep["w3"].shape[1]
    k = kernel_size
    p = k // 2
    Ho = (H + 2 * p - k) // stride + 1
    Wo = (W + 2 * p - k) // stride + 1
    add_residual = (Cin == Cout) and (stride == 1)

    # channels-last, lane-padded, pre-flattened input: (N, H*W, Cin_p)
    x_p = jnp.pad(x.astype(jnp.float32),
                  ((0, 0), (0, 0), (0, 0), (0, Cin_p - Cin)))
    x_p = x_p.reshape(N, H * W, Cin_p)

    kernel = functools.partial(
        _bneck_kernel, H=H, W=W, k=k, stride=stride,
        use_se=se, add_residual=add_residual)

    def full_spec(a):
        zeros = (0,) * a.ndim
        return pl.BlockSpec(a.shape, lambda n, _z=zeros: _z)

    in_specs = [
        pl.BlockSpec((1, H * W, Cin_p), lambda n: (n, 0, 0)),
        full_spec(prep["w1"]), full_spec(prep["bn1b"]),
        full_spec(prep["wdw"]), full_spec(prep["bn2b"]),
        full_spec(prep["wfc1"]), full_spec(prep["wfc2"]),
        full_spec(prep["w3"]), full_spec(prep["bn3b"]),
    ]
    out_spec = pl.BlockSpec((1, Ho * Wo, Cout_p), lambda n: (n, 0, 0))

    R_p = prep["wfc1"].shape[1]
    flops = N * (2 * H * W * Cin_p * E_p
                 + 2 * k * k * H * W * E_p
                 + (4 * E_p * R_p if se else 0)
                 + 2 * Ho * Wo * E_p * Cout_p)
    weight_bytes = sum(int(prep[n].size) * prep[n].dtype.itemsize
                       for n in ("w1", "bn1b", "wdw", "bn2b",
                                 "wfc1", "wfc2", "w3", "bn3b"))
    bytes_accessed = (int(x_p.size) * 4 + N * Ho * Wo * Cout_p * 4 + weight_bytes)

    out = pl.pallas_call(
        kernel,
        out_shape=jax.ShapeDtypeStruct((N, Ho * Wo, Cout_p), jnp.float32),
        grid_spec=pltpu.PrefetchScalarGridSpec(
            num_scalar_prefetch=0,
            grid=(N,),
            in_specs=in_specs,
            out_specs=out_spec,
            scratch_shapes=[
                pltpu.VMEM((H + 2 * p, W + 2 * p, E_p), jnp.float32)],
        ),
        compiler_params=pltpu.CompilerParams(
            dimension_semantics=("parallel",),        # megacore on v7x
            vmem_limit_bytes=32 * 1024 * 1024),
        cost_estimate=pl.CostEstimate(flops=flops, transcendentals=0,
                                      bytes_accessed=bytes_accessed),
    )(x_p, prep["w1"], prep["bn1b"], prep["wdw"], prep["bn2b"],
      prep["wfc1"], prep["wfc2"], prep["w3"], prep["bn3b"])

    # strip channel padding, back to NHWC
    return out.reshape(N, Ho, Wo, Cout_p)[..., :Cout]


# --------------------------------------------------------------------------- #
# Test params + pure-JAX f32 reference (faithful to the PyTorch module)
# --------------------------------------------------------------------------- #
def _fold_bn(gamma, beta, mean, var, eps=1e-5):
    scale = gamma / jnp.sqrt(var + eps)
    bias = beta - mean * scale
    return scale.astype(jnp.float32), bias.astype(jnp.float32)


def _make_params(key, in_ch, out_ch, exp, kernel_size):
    r = max(exp // 4, 1)
    ks = jax.random.split(key, 16)

    def bn(k1, k2, k3, k4, c):
        gamma = 1.0 + 0.1 * jax.random.normal(k1, (c,), jnp.float32)
        beta = 0.05 * jax.random.normal(k2, (c,), jnp.float32)
        mean = 0.1 * jax.random.normal(k3, (c,), jnp.float32)
        var = jax.random.uniform(k4, (c,), jnp.float32, 0.5, 1.5)
        return _fold_bn(gamma, beta, mean, var)

    bn1s, bn1b = bn(ks[3], ks[4], ks[5], ks[6], exp)
    bn2s, bn2b = bn(ks[7], ks[8], ks[9], ks[10], exp)
    bn3s, bn3b = bn(ks[11], ks[12], ks[13], ks[14], out_ch)

    return {
        # 1x1 expand conv weight as (Cin, E)     (PyTorch: (E, Cin, 1, 1))
        "w1": 0.2 * jax.random.normal(ks[0], (in_ch, exp), jnp.float32),
        "bn1s": bn1s, "bn1b": bn1b,
        # depthwise conv weight as (k, k, E)     (PyTorch: (E, 1, k, k))
        "wdw": 0.2 * jax.random.normal(ks[1], (kernel_size, kernel_size, exp),
                                       jnp.float32),
        "bn2s": bn2s, "bn2b": bn2b,
        # SE: fc1 as (E, r), fc2 as (r, E)       (PyTorch Linear weights transposed)
        "wfc1": 0.3 * jax.random.normal(ks[2], (exp, r), jnp.float32),
        "wfc2": 0.3 * jax.random.normal(ks[15], (r, exp), jnp.float32),
        # 1x1 project conv weight as (E, Cout)   (PyTorch: (Cout, E, 1, 1))
        "w3": 0.2 * jax.random.normal(jax.random.fold_in(key, 99),
                                      (exp, out_ch), jnp.float32),
        "bn3s": bn3s, "bn3b": bn3b,
    }


def _ref_forward(x, raw, *, kernel_size, stride, se):
    """Pure-JAX f32 reference (NHWC, eval-mode BN)."""
    N, H, W, Cin = x.shape
    E = raw["w1"].shape[1]
    Cout = raw["w3"].shape[1]
    p = kernel_size // 2

    h1 = jnp.einsum("nhwc,ce->nhwe", x, raw["w1"])
    h1 = jnp.maximum(h1 * raw["bn1s"] + raw["bn1b"], 0.0)

    dw = raw["wdw"].reshape(kernel_size, kernel_size, 1, E)
    h2 = lax.conv_general_dilated(
        h1, dw, window_strides=(stride, stride),
        padding=[(p, p), (p, p)],
        dimension_numbers=("NHWC", "HWIO", "NHWC"),
        feature_group_count=E)
    h2 = jnp.maximum(h2 * raw["bn2s"] + raw["bn2b"], 0.0)

    if se:
        f = h2.mean(axis=(1, 2))                                  # (N, E)
        f = jnp.maximum(f @ raw["wfc1"], 0.0)
        f = jnp.clip((f @ raw["wfc2"] + 3.0) / 6.0, 0.0, 1.0)
        h2 = h2 * f[:, None, None, :]

    h3 = jnp.einsum("nhwe,eo->nhwo", h2, raw["w3"])
    h3 = h3 * raw["bn3s"] + raw["bn3b"]
    if Cin == Cout and stride == 1:
        h3 = h3 + x
    return h3


if __name__ == "__main__":
    key = jax.random.PRNGKey(0)
    N, H, W = 2, 16, 16
    in_ch, out_ch, exp, kernel_size, stride, se = 4, 4, 8, 3, 1, True

    kx, kp = jax.random.split(key)
    # NHWC input (equivalent PyTorch NCHW input would be x.transpose(0, 3, 1, 2))
    x = jax.random.normal(kx, (N, H, W, in_ch), jnp.float32)
    raw = _make_params(kp, in_ch, out_ch, exp, kernel_size)
    prep = prepare_params(raw, kernel_size=kernel_size)

    out = bneck_forward(x, prep, kernel_size=kernel_size, stride=stride, se=se)
    out = jax.block_until_ready(out)

    ref = _ref_forward(x, raw, kernel_size=kernel_size, stride=stride, se=se)
    assert out.shape == ref.shape, (out.shape, ref.shape)
    # tolerance accounts for bf16 MXU inputs (f32 accumulation) in the kernel
    err = float(jnp.max(jnp.abs(out - ref)))
    assert err < 5e-2, f"max abs err = {err}"

    print("KERNEL_OK")
</pallas_src>

<mosaic_0001>
module attributes {stable_mosaic.version = 11 : i64} {
  func.func @_bneck_kernel(%arg0: i32, %arg1: memref<1x256x128xf32, #tpu.memory_space<vmem>>, %arg2: memref<128x128xbf16, #tpu.memory_space<vmem>>, %arg3: memref<1x128xf32, #tpu.memory_space<vmem>>, %arg4: memref<9x128xf32, #tpu.memory_space<vmem>>, %arg5: memref<1x128xf32, #tpu.memory_space<vmem>>, %arg6: memref<128x128xbf16, #tpu.memory_space<vmem>>, %arg7: memref<128x128xbf16, #tpu.memory_space<vmem>>, %arg8: memref<128x128xbf16, #tpu.memory_space<vmem>>, %arg9: memref<1x128xf32, #tpu.memory_space<vmem>>, %arg10: memref<1x256x128xf32, #tpu.memory_space<vmem>>, %arg11: memref<18x18x128xf32, #tpu.memory_space<vmem>>) attributes {dimension_semantics = [#tpu.dimension_semantics<parallel>], iteration_bounds = array<i64: 2>, scalar_prefetch = 0 : i64, scratch_operands = 1 : i64, tpu.core_type = #tpu.core_type<tc>, window_params = [{transform_indices = @transform_0, window_bounds = array<i64: 1, 256, 128>}, {pipeline_mode = #tpu.pipeline_mode<synchronous>, transform_indices = @transform_1, window_bounds = array<i64: 128, 128>}, {pipeline_mode = #tpu.pipeline_mode<synchronous>, transform_indices = @transform_2, window_bounds = array<i64: 1, 128>}, {pipeline_mode = #tpu.pipeline_mode<synchronous>, transform_indices = @transform_3, window_bounds = array<i64: 9, 128>}, {pipeline_mode = #tpu.pipeline_mode<synchronous>, transform_indices = @transform_4, window_bounds = array<i64: 1, 128>}, {pipeline_mode = #tpu.pipeline_mode<synchronous>, transform_indices = @transform_5, window_bounds = array<i64: 128, 128>}, {pipeline_mode = #tpu.pipeline_mode<synchronous>, transform_indices = @transform_6, window_bounds = array<i64: 128, 128>}, {pipeline_mode = #tpu.pipeline_mode<synchronous>, transform_indices = @transform_7, window_bounds = array<i64: 128, 128>}, {pipeline_mode = #tpu.pipeline_mode<synchronous>, transform_indices = @transform_8, window_bounds = array<i64: 1, 128>}, {transform_indices = @transform_9, window_bounds = array<i64: 1, 256, 128>}]} {
    %c0 = arith.constant 0 : index
    %c0_0 = arith.constant 0 : index
    %c0_1 = arith.constant 0 : index
    %0 = vector.load %arg1[%c0, %c0_0, %c0_1] : memref<1x256x128xf32, #tpu.memory_space<vmem>>, vector<1x256x128xf32>
    %1 = vector.shape_cast %0 : vector<1x256x128xf32> to vector<256x128xf32>
    %2 = arith.truncf %1 : vector<256x128xf32> to vector<256x128xbf16>
    %c0_2 = arith.constant 0 : index
    %c0_3 = arith.constant 0 : index
    %3 = vector.load %arg2[%c0_2, %c0_3] : memref<128x128xbf16, #tpu.memory_space<vmem>>, vector<128x128xbf16>
    %cst = arith.constant dense<0.000000e+00> : vector<256x128xf32>
    %4 = tpu.matmul %2, %3, %cst {dimension_numbers = #tpu.dot_dimension_numbers<[1], [0], [0], [1], [0, 0, 1, 1], [], []>} : vector<256x128xbf16>, vector<128x128xbf16>, vector<256x128xf32> -> vector<256x128xf32>
    %c0_4 = arith.constant 0 : index
    %c0_5 = arith.constant 0 : index
    %5 = vector.load %arg3[%c0_4, %c0_5] : memref<1x128xf32, #tpu.memory_space<vmem>>, vector<1x128xf32>
    %6 = vector.broadcast %5 : vector<1x128xf32> to vector<256x128xf32>
    %7 = arith.addf %4, %6 : vector<256x128xf32>
    %cst_6 = arith.constant 0.000000e+00 : f32
    %8 = vector.broadcast %cst_6 : f32 to vector<256x128xf32>
    %9 = arith.maximumf %7, %8 : vector<256x128xf32>
    %cst_7 = arith.constant 0.000000e+00 : f32
    %10 = vector.broadcast %cst_7 : f32 to vector<1x18x128xf32>
    %cst_8 = arith.constant 0.000000e+00 : f32
    %11 = vector.broadcast %cst_8 : f32 to vector<16x1x128xf32>
    %c0_9 = arith.constant 0 : index
    %c0_10 = arith.constant 0 : index
    %c0_11 = arith.constant 0 : index
    %12 = vector.load %arg11[%c0_9, %c0_10, %c0_11] : memref<18x18x128xf32, #tpu.memory_space<vmem>>, vector<1x18x128xf32>
    tpu.vector_store %arg11[%c0_9, %c0_10, %c0_11], %10 {strides = array<i32>} : memref<18x18x128xf32, #tpu.memory_space<vmem>>, vector<1x18x128xf32>,
    %c17 = arith.constant 17 : index
    %c0_12 = arith.constant 0 : index
    %c0_13 = arith.constant 0 : index
    %13 = vector.load %arg11[%c17, %c0_12, %c0_13] : memref<18x18x128xf32, #tpu.memory_space<vmem>>, vector<1x18x128xf32>
    tpu.vector_store %arg11[%c17, %c0_12, %c0_13], %10 {strides = array<i32>} : memref<18x18x128xf32, #tpu.memory_space<vmem>>, vector<1x18x128xf32>,
    %c1 = arith.constant 1 : index
    %c0_14 = arith.constant 0 : index
    %c0_15 = arith.constant 0 : index
    %14 = vector.load %arg11[%c1, %c0_14, %c0_15] : memref<18x18x128xf32, #tpu.memory_space<vmem>>, vector<16x1x128xf32>
    tpu.vector_store %arg11[%c1, %c0_14, %c0_15], %11 {strides = array<i32>} : memref<18x18x128xf32, #tpu.memory_space<vmem>>, vector<16x1x128xf32>,
    %c1_16 = arith.constant 1 : index
    %c17_17 = arith.constant 17 : index
    %c0_18 = arith.constant 0 : index
    %15 = vector.load %arg11[%c1_16, %c17_17, %c0_18] : memref<18x18x128xf32, #tpu.memory_space<vmem>>, vector<16x1x128xf32>
    tpu.vector_store %arg11[%c1_16, %c17_17, %c0_18], %11 {strides = array<i32>} : memref<18x18x128xf32, #tpu.memory_space<vmem>>, vector<16x1x128xf32>,
    %16 = vector.shape_cast %9 : vector<256x128xf32> to vector<16x16x128xf32>
    %c1_19 = arith.constant 1 : index
    %c1_20 = arith.constant 1 : index
    %c0_21 = arith.constant 0 : index
    %17 = vector.load %arg11[%c1_19, %c1_20, %c0_21] : memref<18x18x128xf32, #tpu.memory_space<vmem>>, vector<16x16x128xf32>
    tpu.vector_store %arg11[%c1_19, %c1_20, %c0_21], %16 {strides = array<i32>} : memref<18x18x128xf32, #tpu.memory_space<vmem>>, vector<16x16x128xf32>,
    %c0_22 = arith.constant 0 : index
    %c0_23 = arith.constant 0 : index
    %18 = vector.load %arg4[%c0_22, %c0_23] : memref<9x128xf32, #tpu.memory_space<vmem>>, vector<9x128xf32>
    %cst_24 = arith.constant 0.000000e+00 : f32
    %19 = vector.broadcast %cst_24 : f32 to vector<16x16x128xf32>
    %c0_25 = arith.constant 0 : index
    %c0_26 = arith.constant 0 : index
    %c0_27 = arith.constant 0 : index
    %20 = vector.load %arg11[%c0_25, %c0_26, %c0_27] : memref<18x18x128xf32, #tpu.memory_space<vmem>>, vector<16x16x128xf32>
    %21 = vector.extract_strided_slice %18 {offsets = [0, 0], sizes = [1, 128], strides = [1, 1]} : vector<9x128xf32> to vector<1x128xf32>
    %22 = vector.shape_cast %21 : vector<1x128xf32> to vector<1x1x128xf32>
    %23 = vector.broadcast %22 : vector<1x1x128xf32> to vector<16x16x128xf32>
    %24 = arith.mulf %20, %23 : vector<16x16x128xf32>
    %25 = arith.addf %19, %24 : vector<16x16x128xf32>
    %c0_28 = arith.constant 0 : index
    %c1_29 = arith.constant 1 : index
    %c0_30 = arith.constant 0 : index
    %26 = vector.load %arg11[%c0_28, %c1_29, %c0_30] : memref<18x18x128xf32, #tpu.memory_space<vmem>>, vector<16x16x128xf32>
    %27 = vector.extract_strided_slice %18 {offsets = [1, 0], sizes = [1, 128], strides = [1, 1]} : vector<9x128xf32> to vector<1x128xf32>
    %28 = vector.shape_cast %27 : vector<1x128xf32> to vector<1x1x128xf32>
    %29 = vector.broadcast %28 : vector<1x1x128xf32> to vector<16x16x128xf32>
    %30 = arith.mulf %26, %29 : vector<16x16x128xf32>
    %31 = arith.addf %25, %30 : vector<16x16x128xf32>
    %c0_31 = arith.constant 0 : index
    %c2 = arith.constant 2 : index
    %c0_32 = arith.constant 0 : index
    %32 = vector.load %arg11[%c0_31, %c2, %c0_32] : memref<18x18x128xf32, #tpu.memory_space<vmem>>, vector<16x16x128xf32>
    %33 = vector.extract_strided_slice %18 {offsets = [2, 0], sizes = [1, 128], strides = [1, 1]} : vector<9x128xf32> to vector<1x128xf32>
    %34 = vector.shape_cast %33 : vector<1x128xf32> to vector<1x1x128xf32>
    %35 = vector.broadcast %34 : vector<1x1x128xf32> to vector<16x16x128xf32>
    %36 = arith.mulf %32, %35 : vector<16x16x128xf32>
    %37 = arith.addf %31, %36 : vector<16x16x128xf32>
    %c1_33 = arith.constant 1 : index
    %c0_34 = arith.constant 0 : index
    %c0_35 = arith.constant 0 : index
    %38 = vector.load %arg11[%c1_33, %c0_34, %c0_35] : memref<18x18x128xf32, #tpu.memory_space<vmem>>, vector<16x16x128xf32>
    %39 = vector.extract_strided_slice %18 {offsets = [3, 0], sizes = [1, 128], strides = [1, 1]} : vector<9x128xf32> to vector<1x128xf32>
    %40 = vector.shape_cast %39 : vector<1x128xf32> to vector<1x1x128xf32>
    %41 = vector.broadcast %40 : vector<1x1x128xf32> to vector<16x16x128xf32>
    %42 = arith.mulf %38, %41 : vector<16x16x128xf32>
    %43 = arith.addf %37, %42 : vector<16x16x128xf32>
    %c1_36 = arith.constant 1 : index
    %c1_37 = arith.constant 1 : index
    %c0_38 = arith.constant 0 : index
    %44 = vector.load %arg11[%c1_36, %c1_37, %c0_38] : memref<18x18x128xf32, #tpu.memory_space<vmem>>, vector<16x16x128xf32>
    %45 = vector.extract_strided_slice %18 {offsets = [4, 0], sizes = [1, 128], strides = [1, 1]} : vector<9x128xf32> to vector<1x128xf32>
    %46 = vector.shape_cast %45 : vector<1x128xf32> to vector<1x1x128xf32>
    %47 = vector.broadcast %46 : vector<1x1x128xf32> to vector<16x16x128xf32>
    %48 = arith.mulf %44, %47 : vector<16x16x128xf32>
    %49 = arith.addf %43, %48 : vector<16x16x128xf32>
    %c1_39 = arith.constant 1 : index
    %c2_40 = arith.constant 2 : index
    %c0_41 = arith.constant 0 : index
    %50 = vector.load %arg11[%c1_39, %c2_40, %c0_41] : memref<18x18x128xf32, #tpu.memory_space<vmem>>, vector<16x16x128xf32>
    %51 = vector.extract_strided_slice %18 {offsets = [5, 0], sizes = [1, 128], strides = [1, 1]} : vector<9x128xf32> to vector<1x128xf32>
    %52 = vector.shape_cast %51 : vector<1x128xf32> to vector<1x1x128xf32>
    %53 = vector.broadcast %52 : vector<1x1x128xf32> to vector<16x16x128xf32>
    %54 = arith.mulf %50, %53 : vector<16x16x128xf32>
    %55 = arith.addf %49, %54 : vector<16x16x128xf32>
    %c2_42 = arith.constant 2 : index
    %c0_43 = arith.constant 0 : index
    %c0_44 = arith.constant 0 : index
    %56 = vector.load %arg11[%c2_42, %c0_43, %c0_44] : memref<18x18x128xf32, #tpu.memory_space<vmem>>, vector<16x16x128xf32>
    %57 = vector.extract_strided_slice %18 {offsets = [6, 0], sizes = [1, 128], strides = [1, 1]} : vector<9x128xf32> to vector<1x128xf32>
    %58 = vector.shape_cast %57 : vector<1x128xf32> to vector<1x1x128xf32>
    %59 = vector.broadcast %58 : vector<1x1x128xf32> to vector<16x16x128xf32>
    %60 = arith.mulf %56, %59 : vector<16x16x128xf32>
    %61 = arith.addf %55, %60 : vector<16x16x128xf32>
    %c2_45 = arith.constant 2 : index
    %c1_46 = arith.constant 1 : index
    %c0_47 = arith.constant 0 : index
    %62 = vector.load %arg11[%c2_45, %c1_46, %c0_47] : memref<18x18x128xf32, #tpu.memory_space<vmem>>, vector<16x16x128xf32>
    %63 = vector.extract_strided_slice %18 {offsets = [7, 0], sizes = [1, 128], strides = [1, 1]} : vector<9x128xf32> to vector<1x128xf32>
    %64 = vector.shape_cast %63 : vector<1x128xf32> to vector<1x1x128xf32>
    %65 = vector.broadcast %64 : vector<1x1x128xf32> to vector<16x16x128xf32>
    %66 = arith.mulf %62, %65 : vector<16x16x128xf32>
    %67 = arith.addf %61, %66 : vector<16x16x128xf32>
    %c2_48 = arith.constant 2 : index
    %c2_49 = arith.constant 2 : index
    %c0_50 = arith.constant 0 : index
    %68 = vector.load %arg11[%c2_48, %c2_49, %c0_50] : memref<18x18x128xf32, #tpu.memory_space<vmem>>, vector<16x16x128xf32>
    %69 = vector.extract_strided_slice %18 {offsets = [8, 0], sizes = [1, 128], strides = [1, 1]} : vector<9x128xf32> to vector<1x128xf32>
    %70 = vector.shape_cast %69 : vector<1x128xf32> to vector<1x1x128xf32>
    %71 = vector.broadcast %70 : vector<1x1x128xf32> to vector<16x16x128xf32>
    %72 = arith.mulf %68, %71 : vector<16x16x128xf32>
    %73 = arith.addf %67, %72 : vector<16x16x128xf32>
    %c0_51 = arith.constant 0 : index
    %c0_52 = arith.constant 0 : index
    %74 = vector.load %arg5[%c0_51, %c0_52] : memref<1x128xf32, #tpu.memory_space<vmem>>, vector<1x128xf32>
    %75 = vector.shape_cast %74 : vector<1x128xf32> to vector<1x1x128xf32>
    %76 = vector.broadcast %75 : vector<1x1x128xf32> to vector<16x16x128xf32>
    %77 = arith.addf %73, %76 : vector<16x16x128xf32>
    %cst_53 = arith.constant 0.000000e+00 : f32
    %78 = vector.broadcast %cst_53 : f32 to vector<16x16x128xf32>
    %79 = arith.maximumf %77, %78 : vector<16x16x128xf32>
    %80 = vector.shape_cast %79 : vector<16x16x128xf32> to vector<256x128xf32>
    %cst_54 = arith.constant dense<0.000000e+00> : vector<128xf32>
    %81 = vector.multi_reduction <add>, %80, %cst_54 [0] : vector<256x128xf32> to vector<128xf32>
    %82 = vector.shape_cast %81 : vector<128xf32> to vector<1x128xf32>
    %cst_55 = arith.constant 2.560000e+02 : f32
    %83 = vector.broadcast %cst_55 : f32 to vector<1x128xf32>
    %84 = arith.divf %82, %83 : vector<1x128xf32>
    %85 = arith.truncf %84 : vector<1x128xf32> to vector<1x128xbf16>
    %c0_56 = arith.constant 0 : index
    %c0_57 = arith.constant 0 : index
    %86 = vector.load %arg6[%c0_56, %c0_57] : memref<128x128xbf16, #tpu.memory_space<vmem>>, vector<128x128xbf16>
    %cst_58 = arith.constant dense<0.000000e+00> : vector<1x128xf32>
    %87 = tpu.matmul %85, %86, %cst_58 {dimension_numbers = #tpu.dot_dimension_numbers<[1], [0], [0], [1], [0, 0, 1, 1], [], []>} : vector<1x128xbf16>, vector<128x128xbf16>, vector<1x128xf32> -> vector<1x128xf32>
    %cst_59 = arith.constant 0.000000e+00 : f32
    %88 = vector.broadcast %cst_59 : f32 to vector<1x128xf32>
    %89 = arith.maximumf %87, %88 : vector<1x128xf32>
    %90 = arith.truncf %89 : vector<1x128xf32> to vector<1x128xbf16>
    %c0_60 = arith.constant 0 : index
    %c0_61 = arith.constant 0 : index
    %91 = vector.load %arg7[%c0_60, %c0_61] : memref<128x128xbf16, #tpu.memory_space<vmem>>, vector<128x128xbf16>
    %cst_62 = arith.constant dense<0.000000e+00> : vector<1x128xf32>
    %92 = tpu.matmul %90, %91, %cst_62 {dimension_numbers = #tpu.dot_dimension_numbers<[1], [0], [0], [1], [0, 0, 1, 1], [], []>} : vector<1x128xbf16>, vector<128x128xbf16>, vector<1x128xf32> -> vector<1x128xf32>
    %cst_63 = arith.constant 3.000000e+00 : f32
    %93 = vector.broadcast %cst_63 : f32 to vector<1x128xf32>
    %94 = arith.addf %92, %93 : vector<1x128xf32>
    %cst_64 = arith.constant 6.000000e+00 : f32
    %95 = vector.broadcast %cst_64 : f32 to vector<1x128xf32>
    %96 = arith.divf %94, %95 : vector<1x128xf32>
    %cst_65 = arith.constant 0.000000e+00 : f32
    %cst_66 = arith.constant 1.000000e+00 : f32
    %97 = vector.broadcast %cst_65 : f32 to vector<1x128xf32>
    %98 = arith.maximumf %97, %96 : vector<1x128xf32>
    %99 = vector.broadcast %cst_66 : f32 to vector<1x128xf32>
    %100 = arith.minimumf %99, %98 : vector<1x128xf32>
    %101 = vector.broadcast %100 : vector<1x128xf32> to vector<256x128xf32>
    %102 = arith.mulf %80, %101 : vector<256x128xf32>
    %103 = arith.truncf %102 : vector<256x128xf32> to vector<256x128xbf16>
    %c0_67 = arith.constant 0 : index
    %c0_68 = arith.constant 0 : index
    %104 = vector.load %arg8[%c0_67, %c0_68] : memref<128x128xbf16, #tpu.memory_space<vmem>>, vector<128x128xbf16>
    %cst_69 = arith.constant dense<0.000000e+00> : vector<256x128xf32>
    %105 = tpu.matmul %103, %104, %cst_69 {dimension_numbers = #tpu.dot_dimension_numbers<[1], [0], [0], [1], [0, 0, 1, 1], [], []>} : vector<256x128xbf16>, vector<128x128xbf16>, vector<256x128xf32> -> vector<256x128xf32>
    %c0_70 = arith.constant 0 : index
    %c0_71 = arith.constant 0 : index
    %106 = vector.load %arg9[%c0_70, %c0_71] : memref<1x128xf32, #tpu.memory_space<vmem>>, vector<1x128xf32>
    %107 = vector.broadcast %106 : vector<1x128xf32> to vector<256x128xf32>
    %108 = arith.addf %105, %107 : vector<256x128xf32>
    %109 = arith.addf %108, %1 : vector<256x128xf32>
    %c0_72 = arith.constant 0 : index
    %c0_73 = arith.constant 0 : index
    %c0_74 = arith.constant 0 : index
    %110 = vector.load %arg10[%c0_72, %c0_73, %c0_74] : memref<1x256x128xf32, #tpu.memory_space<vmem>>, vector<1x256x128xf32>
    %111 = vector.shape_cast %110 : vector<1x256x128xf32> to vector<256x128xf32>
    %112 = vector.shape_cast %109 : vector<256x128xf32> to vector<1x256x128xf32>
    tpu.vector_store %arg10[%c0_72, %c0_73, %c0_74], %112 {strides = array<i32>} : memref<1x256x128xf32, #tpu.memory_space<vmem>>, vector<1x256x128xf32>,
    return
  }
  func.func @transform_0(%arg0: i32) -> (i32, i32, i32) {
    %c0_i32 = arith.constant 0 : i32
    %c0_i32_0 = arith.constant 0 : i32
    %c0_i32_1 = arith.constant 0 : i32
    return %arg0, %c0_i32, %c0_i32_0 : i32, i32, i32
  }
  func.func @transform_1(%arg0: i32) -> (i32, i32) {
    %c0_i32 = arith.constant 0 : i32
    %c0_i32_0 = arith.constant 0 : i32
    %c0_i32_1 = arith.constant 0 : i32
    return %c0_i32, %c0_i32_0 : i32, i32
  }
  func.func @transform_2(%arg0: i32) -> (i32, i32) {
    %c0_i32 = arith.constant 0 : i32
    %c0_i32_0 = arith.constant 0 : i32
    %c0_i32_1 = arith.constant 0 : i32
    return %c0_i32, %c0_i32_0 : i32, i32
  }
  func.func @transform_3(%arg0: i32) -> (i32, i32) {
    %c0_i32 = arith.constant 0 : i32
    %c0_i32_0 = arith.constant 0 : i32
    %c0_i32_1 = arith.constant 0 : i32
    return %c0_i32, %c0_i32_0 : i32, i32
  }
  func.func @transform_4(%arg0: i32) -> (i32, i32) {
    %c0_i32 = arith.constant 0 : i32
    %c0_i32_0 = arith.constant 0 : i32
    %c0_i32_1 = arith.constant 0 : i32
    return %c0_i32, %c0_i32_0 : i32, i32
  }
  func.func @transform_5(%arg0: i32) -> (i32, i32) {
    %c0_i32 = arith.constant 0 : i32
    %c0_i32_0 = arith.constant 0 : i32
    %c0_i32_1 = arith.constant 0 : i32
    return %c0_i32, %c0_i32_0 : i32, i32
  }
  func.func @transform_6(%arg0: i32) -> (i32, i32) {
    %c0_i32 = arith.constant 0 : i32
    %c0_i32_0 = arith.constant 0 : i32
    %c0_i32_1 = arith.constant 0 : i32
    return %c0_i32, %c0_i32_0 : i32, i32
  }
  func.func @transform_7(%arg0: i32) -> (i32, i32) {
    %c0_i32 = arith.constant 0 : i32
    %c0_i32_0 = arith.constant 0 : i32
    %c0_i32_1 = arith.constant 0 : i32
    return %c0_i32, %c0_i32_0 : i32, i32
  }
  func.func @transform_8(%arg0: i32) -> (i32, i32) {
    %c0_i32 = arith.constant 0 : i32
    %c0_i32_0 = arith.constant 0 : i32
    %c0_i32_1 = arith.constant 0 : i32
    return %c0_i32, %c0_i32_0 : i32, i32
  }
  func.func @transform_9(%arg0: i32) -> (i32, i32, i32) {
    %c0_i32 = arith.constant 0 : i32
    %c0_i32_0 = arith.constant 0 : i32
    %c0_i32_1 = arith.constant 0 : i32
    return %arg0, %c0_i32, %c0_i32_0 : i32, i32, i32
  }
}

</mosaic_0001>

<bundles_post_ra>
// kernel: tpu_custom_call.1
= control target key start
LH: loop header
LB: loop body
LE: loop exit
PB: predicated region body
PF: predicated region fallthrough
CT: control target
= control target key end

     0   :  { %s4461_s0 = inlined_call_operand.hbm [shape: f32[2,256,128], index: 0, kind: input, shape index: {}]   ;;  %s4462_s1 = inlined_call_operand.hbm [shape: bf16[128,128], index: 1, kind: input, shape index: {}]   ;;  %s4463_s2 = inlined_call_operand.vmem [shape: f32[1,128], index: 2, kind: input, shape index: {}]   ;;  %s4464_s3 = inlined_call_operand.hbm [shape: f32[9,128], index: 3, kind: input, shape index: {}]   ;;  %s4465_s4 = inlined_call_operand.vmem [shape: f32[1,128], index: 4, kind: input, shape index: {}]   ;;  %s4466_s5 = inlined_call_operand.hbm [shape: bf16[128,128], index: 5, kind: input, shape index: {}]   ;;  %s4467_s6 = inlined_call_operand.hbm [shape: bf16[128,128], index: 6, kind: input, shape index: {}]   ;;  %s4468_s7 = inlined_call_operand.hbm [shape: bf16[128,128], index: 7, kind: input, shape index: {}]   ;;  %s4469_s8 = inlined_call_operand.vmem [shape: f32[1,128], index: 8, kind: input, shape index: {}]   ;;  %s4470_s9 = inlined_call_operand.hbm [shape: f32[2,256,128], index: 9, kind: output, shape index: {}]  }
   0x1   :  { %4506 = sst [smem:[#allocation66_spill]] %s4462_s1 }
   0x2   :  { %4507 = sst [smem:[#allocation67_spill]] %s4464_s3 }
   0x3   :  { %4508 = sst [smem:[#allocation68_spill]] %s4466_s5 }
   0x4   :  { %14 = vsyncpa [#allocation4], 0 }
   0x5   :  { %16 = vsyncpa [#allocation4 + $0x1], 0 }
   0x6   :  { %17 = vsyncpa [#allocation7], 0 }
   0x7   :  { %18 = vsyncpa [#allocation10], 0 }
   0x8   :  { %19 = vsyncpa [#allocation13], 0 }
   0x9   :  { %20 = vsyncpa [#allocation5], 0 }
   0xa   :  { %22 = vsyncpa [#allocation5 + $0x1], 0  ;;  %s2987_s30 = smov 0   ;;  %s2989_s10 = smov 0  }
   0xb   :  { %s2991_s11 = smov 0   ;;  %s2993_s12 = smov 0  }
   0xc LB: > { %s4509_s1 = sld [smem:[#allocation66_spill]]  ;;  %s3011_s16 = sadd.s32 4294967295, %s2921_s12   ;;  %s2921_s12 = sphi %s2993_s12, %s4631_s12   ;;  %s2917_s11 = sphi %s2991_s11, %s4630_s11   ;;  %s2913_s10 = sphi %s2989_s10, %s4629_s10   ;;  %s2909_s30 = sphi %s2987_s30, %s4628_s30  }
   0xd   : > { %p2309_p0 = scmp.ge.s32.totalorder %s2921_s12, 1  ;;  %p49_p1 = scmp.eq.s32.totalorder %s3011_s16, 0 }
   0xe   : > { %p253_p2 = scmp.lt.s32.totalorder %s2921_s12, 3  ;;  %s2923_s18 = smov [#allocation6]  }
   0xf   : > { %s266_s19 = sshll.u32 %s2923_s18, 4  ;;  %s4511_s5 = sld [smem:[#allocation68_spill]]  ;;  %s267_s19 = int_to_ptr.vmem [resolvable:$true] %s266_s19 }
  0x10   : > { %p3016_p3 = pnand %p2309_p0, %p253_p2  ;;  %s4513_s3 = sld [smem:[#allocation67_spill]] }
  0x11   : > { %s2924_s27 = smov [#allocation9]   ;;  %s2925_s29 = smov 64  }
  0x12   : > { %s264_s15 = sshll.u32 %s4509_s1, 4  ;;  %p2534_p4 = pneg %p3016_p3  ;;  %s265_s15 = int_to_ptr.hbm [resolvable:$true] %s264_s15 }
  0x13   : > { %s300_s28 = sshll.u32 %s2924_s27, 4  ;;  %s2926_s13 = smov 4   ;;  %s301_s28 = int_to_ptr.vmem [resolvable:$true] %s300_s28 }
  0x14   : > { %p3028_p6 = pnand %p2534_p4, %p49_p1  ;;  %s2927_s14 = smov [#allocation8]  }
  0x15   : > { %s298_s22 = sshll.u32 %s4511_s5, 4  ;;  %s283_s18 = sshll.u32 %s2927_s14, 4  ;;  %s299_s22 = int_to_ptr.hbm [resolvable:$true] %s298_s22  ;;  %s284_s18 = int_to_ptr.vmem [resolvable:$true] %s283_s18 }
  0x16   : > { %s281_s26 = sshll.u32 %s4513_s3, 4  ;;  %s312_s24 = sshll.u32 %s4467_s6, 4  ;;  %s282_s26 = int_to_ptr.hbm [resolvable:$true] %s281_s26  ;;  %s313_s24 = int_to_ptr.hbm [resolvable:$true] %s312_s24 }
  0x17   : > { %2537 = dma.hbm_to_vmem [thread:$0]  (!%p3028_p6), %s265_s15, 1024, %s267_s19, [#allocation7], %s2925_s29, %s2925_s29, %s2926_s13  }
  0x18   : > { %2543 = dma.hbm_to_vmem [thread:$0]  (!%p3028_p6), %s299_s22, 1024, %s301_s28, [#allocation10], %s2925_s29, %s2925_s29, %s2926_s13  }
  0x19   : > { %s4471_s25 = smov 128   ;;  %s4472_s27 = smov 8  }
  0x1a   : > { %2540 = dma.hbm_to_vmem [thread:$0]  (!%p3028_p6), %s282_s26, 256, %s284_s18, [#allocation7], %s4471_s25, %s4471_s25, %s4472_s27  }
  0x1b   : > { %s2930_s15 = smov [#allocation11]   ;;  %s326_s14 = sshll.u32 %s4468_s7, 4  ;;  %s327_s14 = int_to_ptr.hbm [resolvable:$true] %s326_s14 }
  0x1c   : > { %s314_s19 = sshll.u32 %s2930_s15, 4  ;;  %s2931_s26 = smov [#allocation12]   ;;  %s315_s19 = int_to_ptr.vmem [resolvable:$true] %s314_s19 }
  0x1d   : > { %2546 = dma.hbm_to_vmem [thread:$0]  (!%p3028_p6), %s313_s24, 1024, %s315_s19, [#allocation10], %s2925_s29, %s2925_s29, %s2926_s13  }
  0x1e   : > { %s328_s18 = sshll.u32 %s2931_s26, 4  ;;  %s2308_s20 = sadd.s32 4294967294, %s2921_s12   ;;  %s329_s18 = int_to_ptr.vmem [resolvable:$true] %s328_s18 }
  0x1f   : > { %2549 = dma.hbm_to_vmem [thread:$0]  (!%p3028_p6), %s327_s14, 1024, %s329_s18, [#allocation13], %s2925_s29, %s2925_s29, %s2926_s13  }
  0x20   : > { %s3056_s21 = sadd.s32 1, %s2921_s12   ;;  %s35_s15 = sadd.s32 1, %s2917_s11 }
  0x21   : > { %s32_s22 = ssub.s32 %s2921_s12, %s3056_s21  ;;  %p42_p7 = scmp.ne.s32.totalorder %s2917_s11, %s2913_s10 }
  0x22   : > { %p33_p8 = scmp.eq.s32.totalorder %s32_s22, 0  ;;  %p43_p9 = scmp.eq.s32.totalorder %s2921_s12, 0 }
  0x23   : > { %p48_p10 = scmp.ne.s32.totalorder %s2913_s10, %s2909_s30  ;;  %p240_p11 = scmp.eq.s32.totalorder %s3011_s16, 1 }
  0x24   : > { %s3068_s24 = scalar_select %p33_p8, %s2917_s11, %s35_s15  }
  0x25   : > { %p3072_p12 = por %p49_p1, %p48_p10  ;;  %p3076_p13 = por %p240_p11, %p42_p7 }
  0x26   : > { %p246_p0 = scmp.eq.s32.totalorder %s2308_s20, 1  ;;  %p44_p2 = por %p43_p9, %p42_p7 }
  0x27   : > { %s345_s13 = sand.u32 1, %s2917_s11   ;;  %p2563_p6 = scmp.lt.s32.totalorder %s2921_s12, 2 }
  0x28   : > { %p3081_p4 = por %p246_p0, %p48_p10  ;;  %s2316_s28 = sshll.u32 %s345_s13, 8 }
  0x29   : > { %s2460_s14 = sshll.u32 %s2921_s12, 8  ;;  %s349_s25 = scalar_lea.vmem [#allocation3], %s2316_s28 }
  0x2a   : > { %s354_s15 = scalar_lea.hbm %s4461_s0, %s2460_s14  ;;  %s357_s27 = sshll.u32 %s349_s25, 4  ;;  %s358_s27 = int_to_ptr.vmem [resolvable:$true] %s357_s27 }
  0x2b   : > { %s355_s22 = sshll.u32 %s354_s15, 4  ;;  %p3090_p8 = pnand %p2563_p6, %p44_p2  ;;  %s356_s22 = int_to_ptr.hbm [resolvable:$true] %s355_s22 }
  0x2c   : > { %s346_s1 = scalar_lea.sflag [#allocation4], %s345_s13  ;;  %s2813_s3 = sshra.s32 %s356_s22, 4  ;;  %s2814_s3 = int_to_ptr.hbm [resolvable:$true] %s2813_s3 }
  0x2d   : > { %s2815_s5 = scalar_lea.hbm %s2814_s3, 256  ;;  %p2817_p9 = pneg %p3090_p8 }
  0x2e   : > { %p2816_p7 = scmp.ne.s32.totalorder %s2814_s3, %s2815_s5  ;;  %s2820_s25 = scalar_lea.hbm %s4461_s0, 512 }
  0x2f   : > { %p2821_p0 = scmp.lt.s32.totalorder %s2814_s3, %s4461_s0  ;;  %p2822_p2 = scmp.lt.s32.totalorder %s2820_s25, %s2815_s5 }
  0x30   : > { %p2818_p10 = pnand %p2817_p9, %p2816_p7 }
  0x31   : > { %p2823_p6 = por %p2822_p2, %p2821_p0 }
  0x32   : > { %p2819_p11 = pneg %p2818_p10 }
  0x34   : > { %p2824_p5 = pnand %p2823_p6, %p2819_p11 }
  0x36   : > { %2827 = shalt.err (!%p2824_p5)
}
  0x37   : > { %s4518_s13 = smov 8   ;;  %s4519_s15 = smov 128  }
  0x38   : > { %2553 = dma.hbm_to_vmem [thread:$0]  (!%p3090_p8), %s356_s22, 4096, %s358_s27, %s346_s1, %s4519_s15, %s4519_s15, %s4518_s13  }
  0x39   : > { %369 = sbr.rel (%p3016_p3) target bundleno = 1013 (0x3f5), region = 56 }
  0x3e   : > { %s3110_s14 = sand.u32 1, %s2913_s10  }
  0x3f   : > { %s2320_s3 = sshll.u32 %s3110_s14, 8  ;;  %s372_s5 = scalar_lea.sflag [#allocation4], %s3110_s14 }
  0x40   : > { %s3116_s26 = scalar_lea.vmem [#allocation3], %s2320_s3 }
  0x41   : > { %2888 = dma.done.wait (%p3072_p12), %s372_s5, 4096  }
  0x42   : > { %2890 = vsyncadd (%p3072_p12), %s372_s5, 4294963200 }
  0x43   : > { %2892 = dma.done.wait (%p49_p1), [#allocation7], 1280  }
  0x44   : > { %2894 = vsyncadd (%p49_p1), [#allocation7], 4294966016 }
  0x45   : > { %2896 = dma.done.wait (%p49_p1), [#allocation10], 2048  }
  0x46   : > { %2898 = vsyncadd (%p49_p1), [#allocation10], 4294965248 }
  0x47   : > { %2900 = dma.done.wait (%p49_p1), [#allocation13], 1024  }
  0x48   : > { %2902 = vsyncadd (%p49_p1), [#allocation13], 4294966272  ;;  %v2468_v0 = vld [vmem:[#allocation6 + $0x38] sm:$0xff]  ;;  %v2467_v1 = vld [vmem:[#allocation6 + $0x30] sm:$0xff]  ;;  %v2932_v50 = vmov 0.0   ;;  %s4333_s15 = scalar_lea.vmem [#allocation14], %s2320_s3 }
  0x49   : > { %552 = vmatpush.bf16.msra.mxu0 %v2468_v0  ;;  %2494 = vmatpush.bf16.msra.mxu1 %v2468_v0  ;;  %v2466_v2 = vld [vmem:[#allocation6 + $0x28] sm:$0xff]  ;;  %v2465_v3 = vld [vmem:[#allocation6 + $0x20] sm:$0xff]  ;;  %v2464_v4 = vld [vmem:[#allocation6 + $0x18] sm:$0xff]  ;;  %673 = vst [vmem:[#allocation2] sm:$0xff] %v2932_v50  ;;  %s2493_s3 = sshll.u32 %s3011_s16, 8  ;;  %s2184_s27 = sshll.u32 %s4333_s15, 4  ;;  %s2185_s27 = int_to_ptr.vmem [resolvable:$true] %s2184_s27 }
  0x4a   : > { %v2463_v5 = vld [vmem:[#allocation6 + $0x10] sm:$0xff]  ;;  %v2462_v6 = vld [vmem:[#allocation6 + $0x8] sm:$0xff]  ;;  %v2461_v7 = vld [vmem:[#allocation6] sm:$0xff]  ;;  %674 = vst [vmem:[#allocation2 + $0x8] sm:$0xff] %v2932_v50  ;;  %s2183_s17 = scalar_lea.hbm %s4470_s9, %s2493_s3  ;;  %s2172_s22 = scalar_lea.sflag [#allocation5], %s3110_s14 }
  0x4b   : > { %v436_v8 = vld [vmem:[%s3116_s26] sm:$0xff]  ;;  %v437_v9 = vld [vmem:[%s3116_s26 + $0x8] sm:$0xff]  ;;  %v454_v10 = vld [vmem:[%s3116_s26 + $0x90] sm:$0xff]  ;;  %681 = vst [vmem:[#allocation2 + $0x18] sm:$0x1] %v2932_v50  ;;  %s2186_s23 = sshll.u32 %s2183_s17, 4  ;;  %s2187_s23 = int_to_ptr.hbm [resolvable:$true] %s2186_s23 }
  0x4c   : > { %v455_v11 = vld [vmem:[%s3116_s26 + $0x98] sm:$0xff]  ;;  %v468_v12 = vpack.c.bf16 %v437_v9, %v436_v8  ;;  %v438_v14 = vld [vmem:[%s3116_s26 + $0x10] sm:$0xff]  ;;  %v456_v16 = vld [vmem:[%s3116_s26 + $0xa0] sm:$0xff]  ;;  %675 = vst [vmem:[#allocation2 + $0x10] sm:$0x3] %v2932_v50  ;;  %s2857_s16 = sshra.s32 %s2187_s23, 4  ;;  %s2858_s16 = int_to_ptr.hbm [resolvable:$true] %s2857_s16 }
  0x4d   : > { %553 = vmatpush.bf16.msra.mxu0 %v2467_v1  ;;  %2495 = vmatpush.bf16.msra.mxu1 %v2467_v1  ;;  %v477_v13 = vpack.c.bf16 %v455_v11, %v454_v10  ;;  %v439_v15 = vld [vmem:[%s3116_s26 + $0x18] sm:$0xff]  ;;  %v457_v17 = vld [vmem:[%s3116_s26 + $0xa8] sm:$0xff]  ;;  %v440_v20 = vld [vmem:[%s3116_s26 + $0x20] sm:$0xff]  ;;  %677 = vst [vmem:[#allocation2 + $0x198] sm:$0xff] %v2932_v50  ;;  %s2859_s20 = scalar_lea.hbm %s2858_s16, 256  ;;  %s2863_s18 = scalar_lea.hbm %s4470_s9, 512 }
  0x4e   : > { %v469_v18 = vpack.c.bf16 %v439_v15, %v438_v14  ;;  %v478_v19 = vpack.c.bf16 %v457_v17, %v456_v16  ;;  %v441_v21 = vld [vmem:[%s3116_s26 + $0x28] sm:$0xff]  ;;  %v458_v22 = vld [vmem:[%s3116_s26 + $0xb0] sm:$0xff]  ;;  %v459_v23 = vld [vmem:[%s3116_s26 + $0xb8] sm:$0xff]  ;;  %678 = vst [vmem:[#allocation2 + $0x1a0] sm:$0xff] %v2932_v50  ;;  %p2860_p1 = scmp.ne.s32.totalorder %s2858_s16, %s2859_s20  ;;  %p2864_p12 = scmp.lt.s32.totalorder %s2858_s16, %s4470_s9 }
  0x4f   : > { %v470_v24 = vpack.c.bf16 %v441_v21, %v440_v20  ;;  %v479_v25 = vpack.c.bf16 %v459_v23, %v458_v22  ;;  %v442_v26 = vld [vmem:[%s3116_s26 + $0x30] sm:$0xff]  ;;  %v443_v27 = vld [vmem:[%s3116_s26 + $0x38] sm:$0xff]  ;;  %v460_v28 = vld [vmem:[%s3116_s26 + $0xc0] sm:$0xff]  ;;  %679 = vst [vmem:[#allocation2 + $0x1a8] sm:$0x3] %v2932_v50  ;;  %p2865_p8 = scmp.lt.s32.totalorder %s2863_s18, %s2859_s20 }
  0x50   : > { %v461_v29 = vld [vmem:[%s3116_s26 + $0xc8] sm:$0xff]  ;;  %v471_v30 = vpack.c.bf16 %v443_v27, %v442_v26  ;;  %v444_v32 = vld [vmem:[%s3116_s26 + $0x40] sm:$0xff]  ;;  %v462_v34 = vld [vmem:[%s3116_s26 + $0xd0] sm:$0xff]  ;;  %682 = vst [vmem:[#allocation2 + $0x30] sm:$0x1] %v2932_v50  ;;  %p2861_p3 = pnand %p2860_p1, %p3076_p13 }
  0x51   : > { %554 = vmatpush.bf16.msra.mxu0 %v2466_v2  ;;  %2496 = vmatpush.bf16.msra.mxu1 %v2466_v2  ;;  %v480_v31 = vpack.c.bf16 %v461_v29, %v460_v28  ;;  %v445_v33 = vld [vmem:[%s3116_s26 + $0x48] sm:$0xff]  ;;  %v463_v35 = vld [vmem:[%s3116_s26 + $0xd8] sm:$0xff]  ;;  %v446_v38 = vld [vmem:[%s3116_s26 + $0x50] sm:$0xff]  ;;  %683 = vst [vmem:[#allocation2 + $0x48] sm:$0x1] %v2932_v50  ;;  %p2866_p7 = por %p2865_p8, %p2864_p12 }
  0x52   : > { %v472_v36 = vpack.c.bf16 %v445_v33, %v444_v32  ;;  %v481_v37 = vpack.c.bf16 %v463_v35, %v462_v34  ;;  %v447_v39 = vld [vmem:[%s3116_s26 + $0x58] sm:$0xff]  ;;  %v464_v40 = vld [vmem:[%s3116_s26 + $0xe0] sm:$0xff]  ;;  %v465_v41 = vld [vmem:[%s3116_s26 + $0xe8] sm:$0xff]  ;;  %684 = vst [vmem:[#allocation2 + $0x60] sm:$0x1] %v2932_v50  ;;  %p2862_p5 = pneg %p2861_p3 }
  0x53   : > { %v473_v42 = vpack.c.bf16 %v447_v39, %v446_v38  ;;  %v482_v43 = vpack.c.bf16 %v465_v41, %v464_v40  ;;  %v448_v44 = vld [vmem:[%s3116_s26 + $0x60] sm:$0xff]  ;;  %v449_v45 = vld [vmem:[%s3116_s26 + $0x68] sm:$0xff]  ;;  %v466_v46 = vld [vmem:[%s3116_s26 + $0xf0] sm:$0xff]  ;;  %685 = vst [vmem:[#allocation2 + $0x78] sm:$0x1] %v2932_v50 }
  0x54   : > { %v467_v47 = vld [vmem:[%s3116_s26 + $0xf8] sm:$0xff]  ;;  %v474_v48 = vpack.c.bf16 %v449_v45, %v448_v44  ;;  %v450_v51 = vld [vmem:[%s3116_s26 + $0x70] sm:$0xff]  ;;  %686 = vst [vmem:[#allocation2 + $0x90] sm:$0x1] %v2932_v50  ;;  %v452_v54 = vld [vmem:[%s3116_s26 + $0x80] sm:$0xff]  ;;  %p2867_p9 = pnand %p2866_p7, %p2862_p5 }
  0x55   : > { %555 = vmatpush.bf16.msra.mxu0 %v2465_v3  ;;  %2497 = vmatpush.bf16.msra.mxu1 %v2465_v3  ;;  %v483_v49 = vpack.c.bf16 %v467_v47, %v466_v46  ;;  %v451_v52 = vld [vmem:[%s3116_s26 + $0x78] sm:$0xff]  ;;  %687 = vst [vmem:[#allocation2 + $0xa8] sm:$0x1] %v2932_v50  ;;  %v453_v55 = vld [vmem:[%s3116_s26 + $0x88] sm:$0xff]  ;;  %v3169_v56 = vld [vmem:[%s4463_s2] ss:$0 sm:$0xff] }
  0x56   : > { %688 = vst [vmem:[#allocation2 + $0xc0] sm:$0x1] %v2932_v50  ;;  %v475_v53 = vpack.c.bf16 %v451_v52, %v450_v51  ;;  %v476_v57 = vpack.c.bf16 %v453_v55, %v452_v54  ;;  %v745_v62 = vld [vmem:[#allocation8] sm:$0xff]  ;;  %v844_v0 = vld [vmem:[#allocation2 + $0x1] sm:$0xff] }
  0x57   : > { %689 = vst [vmem:[#allocation2 + $0xd8] sm:$0x1] %v2932_v50  ;;  %v3172_v63 = vperm.slane %v745_v62, 0  ;;  %v3174_v3 = vperm.slane %v745_v62, 1  ;;  %v941_v9 = vld [vmem:[#allocation2 + $0x2] sm:$0xff]  ;;  %v942_v23 = vld [vmem:[#allocation2 + $0xa] sm:$0xff] }
  0x58   : > { %690 = vst [vmem:[#allocation2 + $0xf0] sm:$0x1] %v2932_v50  ;;  %v3197_v27 = vperm.slane %v745_v62, 4  ;;  %v3199_v28 = vperm.slane %v745_v62, 5  ;;  %v3214_v47 = vperm.slane %v745_v62, 7 }
  0x59   : > { %556 = vmatpush.bf16.msra.mxu0 %v2464_v4  ;;  %2498 = vmatpush.bf16.msra.mxu1 %v2464_v4  ;;  %691 = vst [vmem:[#allocation2 + $0x108] sm:$0x1] %v2932_v50 }
  0x5a   : > { %692 = vst [vmem:[#allocation2 + $0x120] sm:$0x1] %v2932_v50 }
  0x5b   : > { %693 = vst [vmem:[#allocation2 + $0x138] sm:$0x1] %v2932_v50 }
  0x5c   : > { %694 = vst [vmem:[#allocation2 + $0x150] sm:$0x1] %v2932_v50 }
  0x5d   : > { %557 = vmatpush.bf16.msra.mxu0 %v2463_v5  ;;  %2499 = vmatpush.bf16.msra.mxu1 %v2463_v5  ;;  %695 = vst [vmem:[#allocation2 + $0x168] sm:$0x1] %v2932_v50  ;;  %v780_v5 = vmul.f32 0.0, %v3172_v63 }
  0x5e   : > { %696 = vst [vmem:[#allocation2 + $0x180] sm:$0x1] %v2932_v50 }
  0x5f   : > { %697 = vst [vmem:[#allocation2 + $0x29] sm:$0x1] %v2932_v50 }
  0x60   : > { %698 = vst [vmem:[#allocation2 + $0x41] sm:$0x1] %v2932_v50 }
  0x61   : > { %558 = vmatpush.bf16.msra.mxu0 %v2462_v6  ;;  %2500 = vmatpush.bf16.msra.mxu1 %v2462_v6  ;;  %699 = vst [vmem:[#allocation2 + $0x59] sm:$0x1] %v2932_v50  ;;  %v877_v6 = vmul.f32 %v3174_v3, %v844_v0 }
  0x62   : > { %700 = vst [vmem:[#allocation2 + $0x71] sm:$0x1] %v2932_v50 }
  0x63   : > { %701 = vst [vmem:[#allocation2 + $0x89] sm:$0x1] %v2932_v50  ;;  %v909_v10 = vadd.f32 %v877_v6, %v780_v5 }
  0x64   : > { %702 = vst [vmem:[#allocation2 + $0xa1] sm:$0x1] %v2932_v50 }
  0x65   : > { %559 = vmatpush.bf16.msra.mxu0 %v2461_v7  ;;  %2501 = vmatpush.bf16.msra.mxu1 %v2461_v7  ;;  %703 = vst [vmem:[#allocation2 + $0xb9] sm:$0x1] %v2932_v50  ;;  %v3179_v7 = vperm.slane %v745_v62, 2 }
  0x66   : > { %704 = vst [vmem:[#allocation2 + $0xd1] sm:$0x1] %v2932_v50 }
  0x67   : > { %705 = vst [vmem:[#allocation2 + $0xe9] sm:$0x1] %v2932_v50  ;;  %v974_v11 = vmul.f32 %v3179_v7, %v941_v9 }
  0x68   : > { %560 = vmatmul.bf16.vlgmr.msra.gmra.mxu0 %v468_v12  ;;  %605 = vmatmul.bf16.vlgmr.msra.gmra.mxu1 %v477_v13  ;;  %706 = vst [vmem:[#allocation2 + $0x101] sm:$0x1] %v2932_v50  ;;  %v3182_v12 = vperm.slane %v745_v62, 3  ;;  %v845_v13 = vld [vmem:[#allocation2 + $0x9] sm:$0xff] }
  0x69   : > { %707 = vst [vmem:[#allocation2 + $0x119] sm:$0x1] %v2932_v50  ;;  %v1006_v21 = vadd.f32 %v974_v11, %v909_v10 }
  0x6a   : > { %708 = vst [vmem:[#allocation2 + $0x131] sm:$0x1] %v2932_v50 }
  0x6b   : > { %709 = vst [vmem:[#allocation2 + $0x149] sm:$0x1] %v2932_v50 }
  0x6c   : > { %710 = vst [vmem:[#allocation2 + $0x161] sm:$0x1] %v2932_v50 }
  0x6d   : > { %711 = vst [vmem:[#allocation2 + $0x179] sm:$0x1] %v2932_v50 }
  0x6e   : > { %712 = vst [vmem:[#allocation2 + $0x191] sm:$0x1] %v2932_v50 }
  0x6f   : > { %4520 = vst [vmem:[#allocation20_spill] sm:$0xff] %v3214_v47 }
  0x78   : > { %565 = vmatmul.bf16.gmra.mxu0 %v469_v18  ;;  %610 = vmatmul.bf16.gmra.mxu1 %v478_v19  ;;  %v878_v18 = vmul.f32 %v3174_v3, %v845_v13 }
  0x7a   : > { %v910_v29 = vadd.f32 %v878_v18, %v780_v5 }
  0x88   : > { %570 = vmatmul.bf16.gmra.mxu0 %v470_v24  ;;  %615 = vmatmul.bf16.gmra.mxu1 %v479_v25 }
  0x98   : > { %575 = vmatmul.bf16.gmra.mxu0 %v471_v30  ;;  %620 = vmatmul.bf16.gmra.mxu1 %v480_v31  ;;  %v975_v31 = vmul.f32 %v3179_v7, %v942_v23 }
  0xa8   : > { %580 = vmatmul.bf16.gmra.mxu0 %v472_v36  ;;  %625 = vmatmul.bf16.gmra.mxu1 %v481_v37  ;;  %v3207_v36 = vperm.slane %v745_v62, 6 }
  0xb8   : > { %585 = vmatmul.bf16.gmra.mxu0 %v473_v42  ;;  %630 = vmatmul.bf16.gmra.mxu1 %v482_v43  ;;  %v1007_v43 = vadd.f32 %v975_v31, %v910_v29 }
  0xc8   : > { %590 = vmatmul.bf16.gmra.mxu0 %v474_v48  ;;  %635 = vmatmul.bf16.gmra.mxu1 %v483_v49 }
  0xd8   : > { %595 = vmatmul.bf16.gmra.mxu0 %v475_v53 }
  0xe5   : > { %v561_v58 = vpop.f32.mrf.mxu0  ;;  %v606_v59 = vpop.f32.mrf.mxu1 }
  0xe6   : > { %v562_v60 = vadd.f32 %v3169_v56, %v561_v58  ;;  %v607_v19 = vadd.f32 %v3169_v56, %v606_v59 }
  0xe8   : > { %v641_v61 = vmax.f32 %v562_v60, 0.0  ;;  %600 = vmatmul.bf16.gmra.mxu0 %v476_v57  ;;  %v3193_v25 = vmax.f32 %v607_v19, 0.0 }
  0xea   : > { %713 = vst [vmem:[#allocation2 + $0x19] sm:$0xff] %v641_v61  ;;  %v879_v35 = vmul.f32 %v3174_v3, %v641_v61  ;;  %v1168_v39 = vmul.f32 %v3197_v27, %v641_v61 }
  0xeb   : > { %731 = vst [vmem:[#allocation2 + $0xf1] sm:$0xff] %v3193_v25 }
  0xed   : > { %v563_v1 = vpop.f32.mrf.mxu0  ;;  %v608_v2 = vpop.f32.mrf.mxu1 }
  0xee   : > { %v564_v4 = vadd.f32 %v3169_v56, %v563_v1  ;;  %v609_v20 = vadd.f32 %v3169_v56, %v608_v2 }
  0xf0   : > { %v642_v8 = vmax.f32 %v564_v4, 0.0  ;;  %v3195_v26 = vmax.f32 %v609_v20, 0.0 }
  0xf1   : > { %v749_v14 = vld [vmem:[#allocation2 + $0x18] sm:$0xff] }
  0xf2   : > { %714 = vst [vmem:[#allocation2 + $0x21] sm:$0xff] %v642_v8  ;;  %v1071_v22 = vmul.f32 %v3182_v12, %v749_v14  ;;  %v782_v32 = vmul.f32 %v3172_v63, %v749_v14  ;;  %v880_v55 = vmul.f32 %v3174_v3, %v642_v8  ;;  %v1169_v0 = vmul.f32 %v3197_v27, %v642_v8 }
  0xf3   : > { %732 = vst [vmem:[#allocation2 + $0xf9] sm:$0xff] %v3195_v26 }
  0xf4   : > { %v1103_v33 = vadd.f32 %v1071_v22, %v1006_v21  ;;  %v911_v45 = vadd.f32 %v879_v35, %v782_v32 }
  0xf5   : > { %v566_v15 = vpop.f32.mrf.mxu0  ;;  %v3184_v16 = vpop.f32.mrf.mxu1 }
  0xf6   : > { %v567_v17 = vadd.f32 %v3169_v56, %v566_v15  ;;  %v1200_v46 = vadd.f32 %v1168_v39, %v1103_v33  ;;  %v612_v22 = vadd.f32 %v3169_v56, %v3184_v16 }
  0xf8   : > { %v3191_v24 = vmax.f32 %v567_v17, 0.0 }
  0xf9   : > { %v943_v30 = vld [vmem:[#allocation2 + $0x1a] sm:$0xff]  ;;  %v944_v62 = vld [vmem:[#allocation2 + $0x22] sm:$0xff] }
  0xfa   : > { %715 = vst [vmem:[#allocation2 + $0x31] sm:$0xff] %v3191_v24  ;;  %v750_v34 = vld [vmem:[#allocation2 + $0x20] sm:$0xff]  ;;  %v976_v40 = vmul.f32 %v3179_v7, %v943_v30  ;;  %v1265_v41 = vmul.f32 %v3199_v28, %v943_v30  ;;  %v1170_v59 = vmul.f32 %v3197_v27, %v3191_v24  ;;  %v1460_v61 = vmul.f32 %v3214_v47, %v3191_v24 }
  0xfb   : > { %v1072_v44 = vmul.f32 %v3182_v12, %v750_v34  ;;  %v783_v49 = vmul.f32 %v3172_v63, %v750_v34  ;;  %v977_v11 = vmul.f32 %v3179_v7, %v944_v62  ;;  %v1266_v14 = vmul.f32 %v3199_v28, %v944_v62 }
  0xfc   : > { %v1008_v51 = vadd.f32 %v976_v40, %v911_v45  ;;  %v1297_v52 = vadd.f32 %v1265_v41, %v1200_v46  ;;  %v881_v31 = vmul.f32 %v3174_v3, %v3191_v24  ;;  %v3259_v24 = vld [vmem:[#allocation2 + $0xf0] sm:$0xff] }
  0xfd   : > { %v568_v37 = vpop.f32.mrf.mxu0  ;;  %v613_v38 = vpop.f32.mrf.mxu1  ;;  %v1104_v57 = vadd.f32 %v1072_v44, %v1007_v43  ;;  %v912_v2 = vadd.f32 %v880_v55, %v783_v49  ;;  %v800_v55 = vmul.f32 %v3172_v63, %v3259_v24 }
  0xfe   : > { %v569_v42 = vadd.f32 %v3169_v56, %v568_v37  ;;  %v614_v30 = vadd.f32 %v3169_v56, %v613_v38 }
  0xff   : > { %v1201_v10 = vadd.f32 %v1169_v0, %v1104_v57  ;;  %v1009_v17 = vadd.f32 %v977_v11, %v912_v2  ;;  %v897_v57 = vmul.f32 %v3174_v3, %v3193_v25  ;;  %v3283_v0 = vld [vmem:[#allocation2 + $0xf2] sm:$0xff] }
 0x100   : > { %v3216_v48 = vmax.f32 %v569_v42, 0.0  ;;  %v3257_v42 = vmax.f32 %v612_v22, 0.0  ;;  %v3261_v43 = vmax.f32 %v614_v30, 0.0 }
 0x101   : > { %v751_v50 = vld [vmem:[#allocation2 + $0x30] sm:$0xff]  ;;  %v1298_v19 = vadd.f32 %v1266_v14, %v1201_v10 }
 0x102   : > { %v1073_v53 = vmul.f32 %v3182_v12, %v751_v50  ;;  %v1363_v54 = vmul.f32 %v3207_v36, %v751_v50  ;;  %716 = vst [vmem:[#allocation2 + $0x39] sm:$0xff] %v3216_v48  ;;  %v784_v20 = vmul.f32 %v3172_v63, %v751_v50  ;;  %v1171_v29 = vmul.f32 %v3197_v27, %v3216_v48 }
 0x103   : > { %v1461_v34 = vmul.f32 %v3214_v47, %v3216_v48  ;;  %733 = vst [vmem:[#allocation2 + $0x109] sm:$0xff] %v3257_v42 }
 0x104   : > { %v1105_v58 = vadd.f32 %v1073_v53, %v1008_v51  ;;  %v1395_v60 = vadd.f32 %v1363_v54, %v1297_v52  ;;  %v913_v40 = vadd.f32 %v881_v31, %v784_v20  ;;  %v3268_v52 = vld [vmem:[#allocation2 + $0xf8] sm:$0xff]  ;;  %734 = vst [vmem:[#allocation2 + $0x111] sm:$0xff] %v3261_v43 }
 0x105   : > { %v571_v1 = vpop.f32.mrf.mxu0  ;;  %v616_v9 = vpop.f32.mrf.mxu1  ;;  %v801_v2 = vmul.f32 %v3172_v63, %v3268_v52 }
 0x106   : > { %v1202_v4 = vadd.f32 %v1170_v59, %v1105_v58  ;;  %v3228_v5 = vadd.f32 %v1460_v61, %v1395_v60  ;;  %v572_v6 = vadd.f32 %v3169_v56, %v571_v1  ;;  %v617_v53 = vadd.f32 %v3169_v56, %v616_v9 }
 0x107   : > { %v882_v1 = vmul.f32 %v3174_v3, %v3216_v48  ;;  %v994_v48 = vmul.f32 %v3179_v7, %v3283_v0 }
 0x108   : > { %v3232_v13 = vmax.f32 %v572_v6, 0.0 }
 0x109   : > { %v752_v15 = vld [vmem:[#allocation2 + $0x38] sm:$0xff] }
 0x10a   : > { %v3235_v18 = vld [vmem:[#allocation2 + $0x32] sm:$0xff]  ;;  %v1074_v8 = vmul.f32 %v3182_v12, %v752_v15  ;;  %717 = vst [vmem:[#allocation2 + $0x49] sm:$0xff] %v3232_v13  ;;  %v1364_v21 = vmul.f32 %v3207_v36, %v752_v15  ;;  %v785_v54 = vmul.f32 %v3172_v63, %v752_v15  ;;  %v1172_v60 = vmul.f32 %v3197_v27, %v3232_v13  ;;  %v3291_v9 = vld [vmem:[#allocation2 + $0x3a] sm:$0xff]  ;;  %v3306_v22 = vld [vmem:[#allocation2 + $0x108] sm:$0xff] }
 0x10b   : > { %v978_v32 = vmul.f32 %v3179_v7, %v3235_v18  ;;  %v1267_v16 = vmul.f32 %v3199_v28, %v3235_v18  ;;  %v1462_v62 = vmul.f32 %v3214_v47, %v3232_v13  ;;  %v3296_v15 = vmax.f32 %v617_v53, 0.0 }
 0x10c   : > { %v1106_v23 = vadd.f32 %v1074_v8, %v1009_v17  ;;  %v1396_v33 = vadd.f32 %v1364_v21, %v1298_v19  ;;  %v914_v17 = vadd.f32 %v882_v1, %v785_v54  ;;  %v929_v8 = vadd.f32 %v897_v57, %v800_v55  ;;  %v3298_v19 = vld [vmem:[#allocation2 + $0xfa] sm:$0xff] }
 0x10d   : > { %v573_v35 = vpop.f32.mrf.mxu0  ;;  %v618_v39 = vpop.f32.mrf.mxu1  ;;  %v1010_v44 = vadd.f32 %v978_v32, %v913_v40  ;;  %v1299_v49 = vadd.f32 %v1267_v16, %v1202_v4  ;;  %v898_v4 = vmul.f32 %v3174_v3, %v3195_v26  ;;  %735 = vst [vmem:[#allocation2 + $0x121] sm:$0xff] %v3296_v15  ;;  %v1268_v30 = vmul.f32 %v3199_v28, %v3291_v9 }
 0x10e   : > { %v1203_v37 = vadd.f32 %v1171_v29, %v1106_v23  ;;  %v3254_v41 = vadd.f32 %v1461_v34, %v1396_v33  ;;  %v574_v38 = vadd.f32 %v3169_v56, %v573_v35  ;;  %v619_v58 = vadd.f32 %v3169_v56, %v618_v39 }
 0x10f   : > { %v979_v29 = vmul.f32 %v3179_v7, %v3291_v9  ;;  %v930_v31 = vadd.f32 %v898_v4, %v801_v2  ;;  %v995_v32 = vmul.f32 %v3179_v7, %v3298_v19  ;;  %v1026_v35 = vadd.f32 %v994_v48, %v929_v8 }
 0x110   : > { %v3263_v46 = vmax.f32 %v574_v38, 0.0  ;;  %v3302_v20 = vmax.f32 %v619_v58, 0.0  ;;  %v1091_v40 = vmul.f32 %v3182_v12, %v3306_v22  ;;  %v1300_v38 = vadd.f32 %v1268_v30, %v1203_v37 }
 0x111   : > { %v753_v45 = vld [vmem:[#allocation2 + $0x48] sm:$0xff]  ;;  %v1011_v34 = vadd.f32 %v979_v29, %v914_v17  ;;  %v899_v54 = vmul.f32 %v3174_v3, %v3257_v42  ;;  %v1188_v55 = vmul.f32 %v3197_v27, %v3257_v42  ;;  %v802_v58 = vmul.f32 %v3172_v63, %v3306_v22 }
 0x112   : > { %v1075_v50 = vmul.f32 %v3182_v12, %v753_v45  ;;  %v1365_v51 = vmul.f32 %v3207_v36, %v753_v45  ;;  %718 = vst [vmem:[#allocation2 + $0x51] sm:$0xff] %v3263_v46  ;;  %v1173_v53 = vmul.f32 %v3197_v27, %v3263_v46  ;;  %v1123_v1 = vadd.f32 %v1091_v40, %v1026_v35 }
 0x113   : > { %736 = vst [vmem:[#allocation2 + $0x129] sm:$0xff] %v3302_v20  ;;  %v1189_v30 = vmul.f32 %v3197_v27, %v3261_v43 }
 0x114   : > { %v1107_v59 = vadd.f32 %v1075_v50, %v1010_v44  ;;  %v1397_v61 = vadd.f32 %v1365_v51, %v1299_v49  ;;  %v786_v44 = vmul.f32 %v3172_v63, %v753_v45  ;;  %v883_v49 = vmul.f32 %v3174_v3, %v3232_v13 }
 0x115   : > { %v576_v6 = vpop.f32.mrf.mxu0  ;;  %v3304_v21 = vpop.f32.mrf.mxu1  ;;  %v1463_v13 = vmul.f32 %v3214_v47, %v3263_v46  ;;  %v1220_v17 = vadd.f32 %v1188_v55, %v1123_v1  ;;  %v3380_v55 = vmul.f32 %v3214_v47, %v3193_v25  ;;  %v964_v1 = vld [vmem:[#allocation2 + $0x112] sm:$0xff] }
 0x116   : > { %v1204_v10 = vadd.f32 %v1172_v60, %v1107_v59  ;;  %v3293_v11 = vadd.f32 %v1462_v62, %v1397_v61  ;;  %v577_v14 = vadd.f32 %v3169_v56, %v576_v6  ;;  %v3344_v59 = vld [vmem:[#allocation2 + $0x110] sm:$0xff]  ;;  %v1027_v60 = vadd.f32 %v995_v32, %v930_v31 }
 0x117   : > { %v915_v2 = vadd.f32 %v883_v49, %v786_v44  ;;  %v900_v6 = vmul.f32 %v3174_v3, %v3261_v43  ;;  %v803_v48 = vmul.f32 %v3172_v63, %v3344_v59  ;;  %v1092_v29 = vmul.f32 %v3182_v12, %v3344_v59  ;;  %4522 = vst [vmem:[#allocation22_spill] sm:$0xff] %v3380_v55 }
 0x118   : > { %v3308_v23 = vmax.f32 %v577_v14, 0.0  ;;  %v963_v14 = vld [vmem:[#allocation2 + $0x10a] sm:$0xff] }
 0x119   : > { %v3318_v33 = vld [vmem:[#allocation2 + $0x50] sm:$0xff]  ;;  %v1124_v44 = vadd.f32 %v1092_v29, %v1027_v60  ;;  %v1285_v49 = vmul.f32 %v3199_v28, %v963_v14 }
 0x11a   : > { %719 = vst [vmem:[#allocation2 + $0x61] sm:$0xff] %v3308_v23  ;;  %v3321_v16 = vld [vmem:[#allocation2 + $0x4a] sm:$0xff]  ;;  %v1076_v39 = vmul.f32 %v3182_v12, %v3318_v33  ;;  %v1366_v50 = vmul.f32 %v3207_v36, %v3318_v33 }
 0x11b   : > { %v980_v37 = vmul.f32 %v3179_v7, %v3321_v16  ;;  %v1269_v62 = vmul.f32 %v3199_v28, %v3321_v16 }
 0x11c   : > { %v1108_v51 = vadd.f32 %v1076_v39, %v1011_v34  ;;  %v1398_v45 = vadd.f32 %v1366_v50, %v1300_v38  ;;  %v931_v34 = vadd.f32 %v899_v54, %v802_v58  ;;  %v996_v39 = vmul.f32 %v3179_v7, %v963_v14  ;;  %v3370_v50 = vld [vmem:[#allocation8 + $0x8] ss:$0 sm:$0xff]  ;;  %v3390_v14 = vld [vmem:[#allocation2 + $0x120] sm:$0xff] }
 0x11d   : > { %v578_v57 = vpop.f32.mrf.mxu0  ;;  %v3362_v31 = vpop.f32.mrf.mxu1  ;;  %v1012_v32 = vadd.f32 %v980_v37, %v915_v2  ;;  %v1301_v40 = vadd.f32 %v1269_v62, %v1204_v10  ;;  %v1174_v54 = vmul.f32 %v3197_v27, %v3308_v23  ;;  %v1464_v37 = vmul.f32 %v3214_v47, %v3308_v23 }
 0x11e   : > { %v3346_v61 = vadd.f32 %v1173_v53, %v1108_v51  ;;  %v3350_v4 = vadd.f32 %v1463_v13, %v1398_v45  ;;  %v3374_v51 = vmul.f32 %v3197_v27, %v3193_v25  ;;  %v1221_v45 = vadd.f32 %v1189_v30, %v1124_v44 }
 0x11f   : > { %v3386_v58 = vmul.f32 %v3197_v27, %v3195_v26  ;;  %v932_v62 = vadd.f32 %v900_v6, %v803_v48  ;;  %v1028_v2 = vadd.f32 %v996_v39, %v931_v34  ;;  %v997_v25 = vmul.f32 %v3179_v7, %v964_v1 }
 0x120   : > { %4521 = vst [vmem:[#allocation21_spill] sm:$0xff] %v3374_v51  ;;  %v1557_v30 = vmul.f32 %v3370_v50, %v3235_v18  ;;  %v3404_v6 = vmul.f32 %v3214_v47, %v3195_v26  ;;  %v1093_v48 = vmul.f32 %v3182_v12, %v3390_v14  ;;  %v1480_v18 = vmul.f32 %v3214_v47, %v3296_v15 }
 0x121   : > { %v3354_v8 = vld [vmem:[#allocation2 + $0x60] sm:$0xff]  ;;  %4523 = vst [vmem:[#allocation23_spill] sm:$0xff] %v3386_v58  ;;  %v787_v39 = vmul.f32 %v3172_v63, %v3318_v33  ;;  %v1559_v26 = vmul.f32 %v3370_v50, %v3321_v16 }
 0x122   : > { %v1077_v35 = vmul.f32 %v3182_v12, %v3354_v8  ;;  %v1367_v38 = vmul.f32 %v3207_v36, %v3354_v8  ;;  %4524 = vst [vmem:[#allocation24_spill] sm:$0xff] %v3404_v6  ;;  %v1589_v33 = vadd.f32 %v1557_v30, %v3228_v5  ;;  %v3434_v16 = vld [vmem:[%s4465_s4] ss:$0 sm:$0xff] }
 0x124   : > { %v1109_v53 = vadd.f32 %v1077_v35, %v1012_v32  ;;  %v1399_v10 = vadd.f32 %v1367_v38, %v1301_v40  ;;  %v1317_v32 = vadd.f32 %v1285_v49, %v1220_v17  ;;  %v579_v35 = vadd.f32 %v3169_v56, %v578_v57 }
 0x125   : > { %v581_v13 = vpop.f32.mrf.mxu0  ;;  %v3400_v40 = vmul.f32 %v3182_v12, %v3259_v24  ;;  %v1190_v17 = vmul.f32 %v3197_v27, %v3296_v15  ;;  %v1383_v57 = vmul.f32 %v3207_v36, %v3390_v14  ;;  %v1125_v38 = vadd.f32 %v1093_v48, %v1028_v2  ;;  %v948_v2 = vld [vmem:[#allocation2 + $0x52] sm:$0xff] }
 0x126   : > { %v3388_v60 = vadd.f32 %v1174_v54, %v1109_v53  ;;  %v3392_v29 = vadd.f32 %v1464_v37, %v1399_v10  ;;  %v3408_v34 = vmax.f32 %v579_v35, 0.0  ;;  %v582_v44 = vadd.f32 %v3169_v56, %v581_v13  ;;  %v3428_v37 = vpop.f32.mrf.mxu1 }
 0x127   : > { %v1558_v49 = vmul.f32 %v3370_v50, %v3291_v9  ;;  %v3425_v53 = vmul.f32 %v3207_v36, %v3259_v24  ;;  %v1029_v54 = vadd.f32 %v997_v25, %v932_v62  ;;  %v1415_v10 = vadd.f32 %v1383_v57, %v1317_v32  ;;  %v3442_v62 = vld [vmem:[#allocation2 + $0x128] sm:$0xff] }
 0x128   : > { %720 = vst [vmem:[#allocation2 + $0x69] sm:$0xff] %v3408_v34  ;;  %v884_v9 = vmul.f32 %v3174_v3, %v3263_v46  ;;  %v3438_v13 = vadd.f32 %v1190_v17, %v1125_v38  ;;  %v3440_v24 = vmax.f32 %v582_v44, 0.0  ;;  %v1286_v25 = vmul.f32 %v3199_v28, %v964_v1 }
 0x129   : > { %4525 = vst [vmem:[#allocation25_spill] sm:$0xff] %v3425_v53  ;;  %v3445_v32 = vadd.f32 %v1480_v18, %v1415_v10  ;;  %v1094_v5 = vmul.f32 %v3182_v12, %v3442_v62  ;;  %v1191_v35 = vmul.f32 %v3197_v27, %v3302_v20  ;;  %v1590_v46 = vadd.f32 %v1558_v49, %v3254_v41 }
 0x12a   : > { %v3454_v48 = vmul.f32 %v3182_v12, %v3268_v52  ;;  %v916_v17 = vadd.f32 %v884_v9, %v787_v39  ;;  %v1591_v57 = vadd.f32 %v1559_v26, %v3293_v11  ;;  %721 = vst [vmem:[#allocation2 + $0x79] sm:$0xff] %v3440_v24  ;;  %v3460_v1 = vmul.f32 %v3199_v28, %v3283_v0 }
 0x12b   : > { %4526 = vst [vmem:[#allocation26_spill] sm:$0xff] %v3445_v32  ;;  %v3464_v18 = vmul.f32 %v3199_v28, %v3298_v19  ;;  %v788_v41 = vmul.f32 %v3172_v63, %v3354_v8  ;;  %v1126_v38 = vadd.f32 %v1094_v5, %v1029_v54  ;;  %v3469_v44 = vadd.f32 %v3434_v16, %v1589_v33 }
 0x12c   : > { %4527 = vst [vmem:[#allocation27_spill] sm:$0xff] %v3460_v1  ;;  %v981_v39 = vmul.f32 %v3179_v7, %v948_v2  ;;  %v1270_v11 = vmul.f32 %v3199_v28, %v948_v2  ;;  %v885_v26 = vmul.f32 %v3174_v3, %v3308_v23  ;;  %v1560_v49 = vmul.f32 %v3370_v50, %v948_v2 }
 0x12d   : > { %v583_v30 = vpop.f32.mrf.mxu0  ;;  %4528 = vst [vmem:[#allocation28_spill] sm:$0xff] %v3464_v18  ;;  %v1318_v10 = vadd.f32 %v1286_v25, %v1221_v45  ;;  %v3476_v9 = vadd.f32 %v1191_v35, %v1126_v38  ;;  %v1384_v19 = vmul.f32 %v3207_v36, %v3442_v62  ;;  %v3481_v8 = vadd.f32 %v3434_v16, %v1590_v46 }
 0x12e   : > { %4529 = vst [vmem:[#allocation29_spill] sm:$0xff] %v3469_v44  ;;  %v1013_v54 = vadd.f32 %v981_v39, %v916_v17  ;;  %v1302_v33 = vadd.f32 %v1270_v11, %v3346_v61  ;;  %v3485_v5 = vadd.f32 %v3434_v16, %v1591_v57  ;;  %v1592_v23 = vadd.f32 %v1560_v49, %v3350_v4  ;;  %v628_v35 = vpop.f32.mrf.mxu1 }
 0x12f   : > { %4530 = vst [vmem:[#allocation30_spill] sm:$0xff] %v3481_v8  ;;  %v756_v32 = vld [vmem:[#allocation2 + $0x68] sm:$0xff]  ;;  %v917_v2 = vadd.f32 %v885_v26, %v788_v41  ;;  %v1175_v46 = vmul.f32 %v3197_v27, %v3408_v34  ;;  %v1465_v57 = vmul.f32 %v3214_v47, %v3408_v34  ;;  %v1416_v4 = vadd.f32 %v1384_v19, %v1318_v10 }
 0x130   : > { %4531 = vst [vmem:[#allocation31_spill] sm:$0xff] %v3485_v5  ;;  %v949_v6 = vld [vmem:[#allocation2 + $0x62] sm:$0xff]  ;;  %v1078_v25 = vmul.f32 %v3182_v12, %v756_v32  ;;  %v1368_v61 = vmul.f32 %v3207_v36, %v756_v32  ;;  %v1481_v41 = vmul.f32 %v3214_v47, %v3302_v20  ;;  %v584_v11 = vadd.f32 %v3169_v56, %v583_v30 }
 0x131   : > { %v982_v45 = vmul.f32 %v3179_v7, %v949_v6  ;;  %v1271_v17 = vmul.f32 %v3199_v28, %v949_v6  ;;  %v3496_v39 = vld [vmem:[#allocation2 + $0x78] sm:$0xff]  ;;  %v622_v53 = vadd.f32 %v3169_v56, %v3304_v21  ;;  %v624_v18 = vadd.f32 %v3169_v56, %v3362_v31 }
 0x132   : > { %v1110_v38 = vadd.f32 %v1078_v25, %v1013_v54  ;;  %v1400_v55 = vadd.f32 %v1368_v61, %v1302_v33  ;;  %v1079_v10 = vmul.f32 %v3182_v12, %v3496_v39  ;;  %v1369_v19 = vmul.f32 %v3207_v36, %v3496_v39 }
 0x133   : > { %v1014_v49 = vadd.f32 %v982_v45, %v917_v2  ;;  %v1303_v54 = vadd.f32 %v1271_v17, %v3388_v60  ;;  %v4475_v30 = vmax.f32 %v3469_v44, 0.0  ;;  %v4474_v33 = vmax.f32 %v3481_v8, 0.0 }
 0x134   : > { %v3505_v1 = vadd.f32 %v1175_v46, %v1110_v38  ;;  %v3514_v2 = vadd.f32 %v1465_v57, %v1400_v55  ;;  %v1176_v21 = vmul.f32 %v3197_v27, %v3440_v24  ;;  %v1466_v60 = vmul.f32 %v3214_v47, %v3440_v24 }
 0x135   : > { %v586_v26 = vpop.f32.mrf.mxu0  ;;  %v1111_v31 = vadd.f32 %v1079_v10, %v1014_v49  ;;  %v1401_v45 = vadd.f32 %v1369_v19, %v1303_v54  ;;  %v3520_v25 = vadd.f32 %v1481_v41, %v1416_v4  ;;  %v3523_v46 = vadd.f32 %v3434_v16, %v1592_v23 }
 0x136   : > { %v4473_v17 = vmax.f32 %v3485_v5, 0.0  ;;  %v3526_v61 = vmax.f32 %v584_v11, 0.0  ;;  %v3528_v38 = vmax.f32 %v622_v53, 0.0  ;;  %v587_v49 = vadd.f32 %v3169_v56, %v586_v26  ;;  %v3537_v10 = vpop.f32.mrf.mxu1 }
 0x137   : > { %4532 = vst [vmem:[#allocation32_spill] sm:$0xff] %v3520_v25  ;;  %v3530_v55 = vadd.f32 %v1176_v21, %v1111_v31  ;;  %v3532_v57 = vadd.f32 %v1466_v60, %v1401_v45  ;;  %v3535_v54 = vmax.f32 %v624_v18, 0.0  ;;  %v1689_v23 = vadd.f32 %v4474_v33, %v4475_v30  ;;  %v950_v21 = vld [vmem:[#allocation2 + $0x6a] sm:$0xff] }
 0x138   : > { %4533 = vst [vmem:[#allocation33_spill] sm:$0xff] %v3523_v46  ;;  %v789_v4 = vmul.f32 %v3172_v63, %v756_v32  ;;  %v804_v53 = vmul.f32 %v3172_v63, %v3390_v14  ;;  %v901_v41 = vmul.f32 %v3174_v3, %v3296_v15  ;;  %v3551_v18 = vmul.f32 %v3207_v36, %v3268_v52 }
 0x139   : > { %722 = vst [vmem:[#allocation2 + $0x81] sm:$0xff] %v3526_v61  ;;  %v3555_v11 = vmul.f32 %v3370_v50, %v3283_v0  ;;  %v3559_v26 = vmul.f32 %v3214_v47, %v3257_v42  ;;  %v3563_v14 = vmul.f32 %v3214_v47, %v3261_v43  ;;  %v1690_v32 = vadd.f32 %v1689_v23, %v4473_v17 }
 0x13a   : > { %4534 = vst [vmem:[#allocation34_spill] sm:$0xff] %v3551_v18  ;;  %v886_v52 = vmul.f32 %v3174_v3, %v3408_v34  ;;  %v1561_v0 = vmul.f32 %v3370_v50, %v949_v6  ;;  %v3571_v19 = vmax.f32 %v587_v49, 0.0  ;;  %v4476_v42 = vmax.f32 %v3523_v46, 0.0  ;;  %v3583_v49 = vld [vmem:[#allocation2 + $0x122] sm:$0xff] }
 0x13b   : > { %4535 = vst [vmem:[#allocation35_spill] sm:$0xff] %v3555_v11  ;;  %v627_v31 = vadd.f32 %v3169_v56, %v3428_v37  ;;  %v629_v45 = vadd.f32 %v3169_v56, %v628_v35  ;;  %v933_v23 = vadd.f32 %v901_v41, %v804_v53  ;;  %v805_v34 = vmul.f32 %v3172_v63, %v3442_v62  ;;  %v3604_v41 = vld [vmem:[#allocation2 + $0x12a] sm:$0xff] }
 0x13c   : > { %4536 = vst [vmem:[#allocation36_spill] sm:$0xff] %v3559_v26  ;;  %v918_v60 = vadd.f32 %v886_v52, %v789_v4  ;;  %v902_v6 = vmul.f32 %v3174_v3, %v3302_v20  ;;  %v3596_v4 = vmul.f32 %v3207_v36, %v3306_v22  ;;  %v3600_v20 = vmul.f32 %v3207_v36, %v3344_v59 }
 0x13d   : > { %4537 = vst [vmem:[#allocation37_spill] sm:$0xff] %v3563_v14  ;;  %v588_v15 = vpop.f32.mrf.mxu0  ;;  %v3590_v37 = vmax.f32 %v627_v31, 0.0  ;;  %v3592_v35 = vmax.f32 %v629_v45, 0.0  ;;  %v983_v62 = vmul.f32 %v3179_v7, %v950_v21  ;;  %v1593_v53 = vadd.f32 %v1561_v0, %v3392_v29 }
 0x13e   : > { %737 = vst [vmem:[#allocation2 + $0x139] sm:$0xff] %v3528_v38  ;;  %v589_v43 = vadd.f32 %v3169_v56, %v588_v15  ;;  %v998_v15 = vmul.f32 %v3179_v7, %v3583_v49  ;;  %v1691_v52 = vadd.f32 %v1690_v32, %v4476_v42  ;;  %v790_v31 = vmul.f32 %v3172_v63, %v3496_v39 }
 0x13f   : > { %738 = vst [vmem:[#allocation2 + $0x141] sm:$0xff] %v3535_v54  ;;  %v999_v22 = vmul.f32 %v3179_v7, %v3604_v41  ;;  %v1015_v33 = vadd.f32 %v983_v62, %v918_v60  ;;  %v887_v29 = vmul.f32 %v3174_v3, %v3440_v24  ;;  %v934_v0 = vadd.f32 %v902_v6, %v805_v34  ;;  %v3624_v60 = vpop.f32.mrf.mxu1  ;;  %v2476_v62 = vld [vmem:[#allocation9 + $0x38] sm:$0xff] }
 0x140   : > { %4538 = vst [vmem:[#allocation38_spill] sm:$0xff] %v3583_v49  ;;  %v3588_v17 = vmax.f32 %v589_v43, 0.0  ;;  %v1272_v43 = vmul.f32 %v3199_v28, %v950_v21  ;;  %v758_v45 = vld [vmem:[#allocation2 + $0x80] sm:$0xff]  ;;  %v1562_v39 = vmul.f32 %v3370_v50, %v950_v21  ;;  %v1030_v42 = vadd.f32 %v998_v15, %v933_v23  ;;  %1799 = vmatpush.bf16.msrb.mxu1 %v2476_v62 }
 0x141   : > { %723 = vst [vmem:[#allocation2 + $0x91] sm:$0xff] %v3571_v19  ;;  %v951_v59 = vld [vmem:[#allocation2 + $0x7a] sm:$0xff]  ;;  %v1080_v30 = vmul.f32 %v3182_v12, %v758_v45  ;;  %v1370_v46 = vmul.f32 %v3207_v36, %v758_v45  ;;  %v3627_v24 = vadd.f32 %v3434_v16, %v1593_v53  ;;  %v919_v21 = vadd.f32 %v887_v29, %v790_v31 }
 0x142   : > { %4539 = vst [vmem:[#allocation39_spill] sm:$0xff] %v3590_v37  ;;  %v1304_v32 = vadd.f32 %v1272_v43, %v3505_v1  ;;  %v984_v34 = vmul.f32 %v3179_v7, %v951_v59  ;;  %v1177_v1 = vmul.f32 %v3197_v27, %v3526_v61  ;;  %v1273_v23 = vmul.f32 %v3199_v28, %v951_v59 }
 0x143   : > { %4540 = vst [vmem:[#allocation40_spill] sm:$0xff] %v3592_v35  ;;  %v1112_v6 = vadd.f32 %v1080_v30, %v1015_v33  ;;  %v1467_v43 = vmul.f32 %v3214_v47, %v3526_v61  ;;  %v1594_v53 = vadd.f32 %v1562_v39, %v3514_v2  ;;  %v1192_v30 = vmul.f32 %v3197_v27, %v3528_v38 }
 0x144   : > { %4541 = vst [vmem:[#allocation41_spill] sm:$0xff] %v3596_v4  ;;  %v1402_v15 = vadd.f32 %v1370_v46, %v1304_v32  ;;  %v1287_v33 = vmul.f32 %v3199_v28, %v3583_v49  ;;  %v1288_v46 = vmul.f32 %v3199_v28, %v3604_v41  ;;  %v791_v31 = vmul.f32 %v3172_v63, %v758_v45 }
 0x145   : > { %4542 = vst [vmem:[#allocation42_spill] sm:$0xff] %v3600_v20  ;;  %v3621_v5 = vpop.f32.mrf.mxu0  ;;  %v773_v8 = vld [vmem:[#allocation2 + $0x138] sm:$0xff]  ;;  %v1209_v25 = vadd.f32 %v1177_v1, %v1112_v6  ;;  %v1016_v32 = vadd.f32 %v984_v34, %v919_v21  ;;  %v1563_v14 = vmul.f32 %v3370_v50, %v951_v59  ;;  %v4482_v6 = vmax.f32 %v3627_v24, 0.0  ;;  %v952_v34 = vld [vmem:[#allocation2 + $0x82] sm:$0xff] }
 0x146   : > { %4543 = vst [vmem:[#allocation43_spill] sm:$0xff] %v3604_v41  ;;  %v1095_v11 = vmul.f32 %v3182_v12, %v773_v8  ;;  %v1499_v29 = vadd.f32 %v1467_v43, %v1402_v15  ;;  %v888_v1 = vmul.f32 %v3174_v3, %v3526_v61  ;;  %v1305_v62 = vadd.f32 %v1273_v23, %v3530_v55 }
 0x147   : > { %724 = vst [vmem:[#allocation2 + $0x99] sm:$0xff] %v3588_v17  ;;  %v3656_v45 = vadd.f32 %v3434_v16, %v1594_v53  ;;  %v3662_v59 = vadd.f32 %v999_v22, %v934_v0  ;;  %v1468_v61 = vmul.f32 %v3214_v47, %v3571_v19  ;;  %v1319_v23 = vadd.f32 %v1287_v33, %v3438_v13 }
 0x148   : > { %739 = vst [vmem:[#allocation2 + $0x151] sm:$0xff] %v3590_v37  ;;  %v3635_v44 = vld [vmem:[#allocation2 + $0x90] sm:$0xff]  ;;  %v1127_v2 = vadd.f32 %v1095_v11, %v1030_v42  ;;  %v1178_v42 = vmul.f32 %v3197_v27, %v3571_v19  ;;  %v920_v15 = vadd.f32 %v888_v1, %v791_v31  ;;  %v3668_v53 = vadd.f32 %v1288_v46, %v3476_v9 }
 0x149   : > { %740 = vst [vmem:[#allocation2 + $0x159] sm:$0xff] %v3592_v35  ;;  %v1081_v39 = vmul.f32 %v3182_v12, %v3635_v44  ;;  %v1371_v41 = vmul.f32 %v3207_v36, %v3635_v44  ;;  %v1692_v22 = vadd.f32 %v1691_v52, %v4482_v6  ;;  %v985_v0 = vmul.f32 %v3179_v7, %v952_v34  ;;  %v2475_v6 = vld [vmem:[#allocation9 + $0x30] sm:$0xff] }
 0x14a   : > { %4544 = vst [vmem:[#allocation44_spill] sm:$0xff] %v3627_v24  ;;  %v3658_v21 = vadd.f32 %v1192_v30, %v1127_v2  ;;  %v1595_v30 = vadd.f32 %v1563_v14, %v3532_v57  ;;  %v4485_v13 = vmax.f32 %v3656_v45, 0.0  ;;  %v1274_v9 = vmul.f32 %v3199_v28, %v952_v34  ;;  %1800 = vmatpush.bf16.msrb.mxu1 %v2475_v6 }
 0x14b   : > { %4545 = vst [vmem:[#allocation45_spill] sm:$0xff] %v3656_v45  ;;  %v1113_v11 = vadd.f32 %v1081_v39, %v1016_v32  ;;  %v1403_v43 = vadd.f32 %v1371_v41, %v1305_v62  ;;  %v903_v41 = vmul.f32 %v3174_v3, %v3528_v38  ;;  %v636_v39 = vpop.f32.mrf.mxu1  ;;  %v3682_v57 = vmul.f32 %v3214_v47, %v3528_v38 }
 0x14c   : > { %4546 = vst [vmem:[#allocation46_spill] sm:$0xff] %v3658_v21  ;;  %v904_v14 = vmul.f32 %v3174_v3, %v3535_v54  ;;  %v1017_v33 = vadd.f32 %v985_v0, %v920_v15  ;;  %v3688_v52 = vmul.f32 %v3197_v27, %v3535_v54  ;;  %v3692_v46 = vmul.f32 %v3214_v47, %v3535_v54 }
 0x14d   : > { %v593_v55 = vpop.f32.mrf.mxu0  ;;  %4547 = vst [vmem:[#allocation47_spill] sm:$0xff] %v3668_v53  ;;  %v3671_v2 = vadd.f32 %v1178_v42, %v1113_v11  ;;  %v1500_v31 = vadd.f32 %v1468_v61, %v1403_v43  ;;  %v1306_v62 = vadd.f32 %v1274_v9, %v1209_v25  ;;  %v1564_v11 = vmul.f32 %v3370_v50, %v952_v34 }
 0x14e   : > { %v760_v32 = vld [vmem:[#allocation2 + $0x98] sm:$0xff]  ;;  %4548 = vst [vmem:[#allocation48_spill] sm:$0xff] %v3682_v57  ;;  %v3697_v38 = vadd.f32 %v3434_v16, %v1595_v30  ;;  %v806_v15 = vmul.f32 %v3172_v63, %v773_v8  ;;  %v1385_v61 = vmul.f32 %v3207_v36, %v773_v8  ;;  %v1179_v54 = vmul.f32 %v3197_v27, %v3588_v17 }
 0x14f   : > { %4549 = vst [vmem:[#allocation49_spill] sm:$0xff] %v3692_v46  ;;  %v1082_v1 = vmul.f32 %v3182_v12, %v760_v32  ;;  %v953_v42 = vld [vmem:[#allocation2 + $0x92] sm:$0xff]  ;;  %v1372_v43 = vmul.f32 %v3207_v36, %v760_v32  ;;  %v1693_v25 = vadd.f32 %v1692_v22, %v4485_v13  ;;  %v1596_v9 = vadd.f32 %v1564_v11, %v1499_v29  ;;  %v954_v8 = vld [vmem:[#allocation2 + $0x9a] sm:$0xff] }
 0x150   : > { %4550 = vst [vmem:[#allocation50_spill] sm:$0xff] %v3697_v38  ;;  %v1469_v30 = vmul.f32 %v3214_v47, %v3588_v17  ;;  %v889_v24 = vmul.f32 %v3174_v3, %v3571_v19  ;;  %v890_v49 = vmul.f32 %v3174_v3, %v3588_v17  ;;  %v4488_v22 = vmax.f32 %v3697_v38, 0.0  ;;  %v3846_v57 = vld [vmem:[#allocation2 + $0x15a] sm:$0xff] }
 0x151   : > { %v1114_v0 = vadd.f32 %v1082_v1, %v1017_v33  ;;  %v1404_v34 = vadd.f32 %v1372_v43, %v1306_v62  ;;  %v1565_v1 = vmul.f32 %v3370_v50, %v953_v42  ;;  %v792_v29 = vmul.f32 %v3172_v63, %v3635_v44  ;;  %v774_v62 = vld [vmem:[#allocation2 + $0x140] sm:$0xff]  ;;  %4565 = vst [vmem:[#allocation62_spill] sm:$0xff] %v3846_v57 }
 0x152   : > { %v592_v19 = vadd.f32 %v3169_v56, %v3621_v5  ;;  %v935_v43 = vadd.f32 %v903_v41, %v806_v15  ;;  %v3720_v13 = vadd.f32 %v1385_v61, %v1319_v23  ;;  %v807_v17 = vmul.f32 %v3172_v63, %v774_v62 }
 0x153   : > { %v3712_v33 = vadd.f32 %v1179_v54, %v1114_v0  ;;  %v1501_v11 = vadd.f32 %v1469_v30, %v1404_v34  ;;  %v3725_v0 = vmul.f32 %v3174_v3, %v3590_v37  ;;  %v3728_v6 = vadd.f32 %v3434_v16, %v1596_v9  ;;  %v3734_v30 = vld [vmem:[#allocation2 + $0x13a] sm:$0xff]  ;;  %v638_v61 = vpop.f32.mrf.mxu1 }
 0x154   : > { %4551 = vst [vmem:[#allocation51_spill] sm:$0xff] %v3720_v13  ;;  %v1566_v54 = vmul.f32 %v3370_v50, %v954_v8  ;;  %v3731_v44 = vmax.f32 %v592_v19, 0.0  ;;  %v594_v34 = vadd.f32 %v3169_v56, %v593_v55  ;;  %v1597_v5 = vadd.f32 %v1565_v1, %v1500_v31 }
 0x155   : > { %v596_v21 = vpop.f32.mrf.mxu0  ;;  %4552 = vst [vmem:[#allocation52_spill] sm:$0xff] %v3728_v6  ;;  %v632_v23 = vadd.f32 %v3169_v56, %v3537_v10  ;;  %v634_v15 = vadd.f32 %v3169_v56, %v3624_v60  ;;  %v1694_v9 = vadd.f32 %v1693_v25, %v4488_v22  ;;  %v921_v45 = vadd.f32 %v889_v24, %v792_v29  ;;  %v3753_v60 = vld [vmem:[#allocation2 + $0x142] sm:$0xff] }
 0x156   : > { %4553 = vst [vmem:[#allocation53_spill] sm:$0xff] %v3734_v30  ;;  %v597_v41 = vadd.f32 %v3169_v56, %v596_v21  ;;  %v1000_v19 = vmul.f32 %v3179_v7, %v3734_v30  ;;  %v793_v55 = vmul.f32 %v3172_v63, %v760_v32  ;;  %v1598_v31 = vadd.f32 %v1566_v54, %v1501_v11  ;;  %v3790_v32 = vld [vmem:[#allocation2 + $0x150] sm:$0xff] }
 0x157   : > { %725 = vst [vmem:[#allocation2 + $0xa9] sm:$0xff] %v3731_v44  ;;  %v3747_v1 = vmax.f32 %v594_v34, 0.0  ;;  %v3749_v10 = vmax.f32 %v632_v23, 0.0  ;;  %v1096_v38 = vmul.f32 %v3182_v12, %v774_v62  ;;  %v3756_v25 = vmax.f32 %v634_v15, 0.0 }
 0x158   : > { %v3751_v21 = vmax.f32 %v597_v41, 0.0  ;;  %4554 = vst [vmem:[#allocation54_spill] sm:$0xff] %v3753_v60  ;;  %v637_v24 = vadd.f32 %v3169_v56, %v636_v39  ;;  %v639_v29 = vadd.f32 %v3169_v56, %v638_v61  ;;  %v3761_v22 = vadd.f32 %v904_v14, %v807_v17 }
 0x159   : > { %v3765_v11 = vmul.f32 %v3179_v7, %v3753_v60  ;;  %v3768_v54 = vadd.f32 %v3434_v16, %v1597_v5  ;;  %726 = vst [vmem:[#allocation2 + $0xb1] sm:$0xff] %v3747_v1  ;;  %v922_v23 = vadd.f32 %v890_v49, %v793_v55  ;;  %v986_v41 = vmul.f32 %v3179_v7, %v953_v42  ;;  %v3805_v60 = vld [vmem:[#allocation2 + $0x158] sm:$0xff] }
 0x15a   : > { %v1275_v39 = vmul.f32 %v3199_v28, %v953_v42  ;;  %741 = vst [vmem:[#allocation2 + $0x169] sm:$0xff] %v3749_v10  ;;  %v1032_v17 = vadd.f32 %v1000_v19, %v935_v43  ;;  %v3776_v15 = vadd.f32 %v3434_v16, %v1598_v31  ;;  %v3779_v5 = vmax.f32 %v637_v24, 0.0 }
 0x15b   : > { %4555 = vst [vmem:[#allocation55_spill] sm:$0xff] %v3768_v54  ;;  %v3781_v61 = vmax.f32 %v639_v29, 0.0  ;;  %v3784_v49 = vadd.f32 %v1096_v38, %v3662_v59  ;;  %v3787_v55 = vmul.f32 %v3207_v36, %v774_v62  ;;  %v987_v42 = vmul.f32 %v3179_v7, %v954_v8  ;;  %v2474_v38 = vld [vmem:[#allocation9 + $0x28] sm:$0xff] }
 0x15c   : > { %4556 = vst [vmem:[#allocation56_spill] sm:$0xff] %v3776_v15  ;;  %v4559_v43 = vmax.f32 %v3728_v6, 0.0  ;;  %v1276_v31 = vmul.f32 %v3199_v28, %v954_v8  ;;  %v808_v59 = vmul.f32 %v3172_v63, %v3790_v32  ;;  %v1018_v62 = vadd.f32 %v986_v41, %v921_v45  ;;  %1801 = vmatpush.bf16.msrb.mxu1 %v2474_v38 }
 0x15d   : > { %v598_v34 = vpop.f32.mrf.mxu0  ;;  %727 = vst [vmem:[#allocation2 + $0xc1] sm:$0xff] %v3751_v21  ;;  %v1019_v29 = vadd.f32 %v987_v42, %v922_v23  ;;  %v809_v45 = vmul.f32 %v3172_v63, %v3805_v60  ;;  %v891_v23 = vmul.f32 %v3174_v3, %v3731_v44  ;;  %v4562_v42 = vmax.f32 %v3768_v54, 0.0 }
 0x15e   : > { %v599_v14 = vadd.f32 %v3169_v56, %v598_v34  ;;  %4557 = vst [vmem:[#allocation57_spill] sm:$0xff] %v3787_v55  ;;  %v1695_v19 = vadd.f32 %v1694_v9, %v4559_v43  ;;  %v1307_v34 = vadd.f32 %v1275_v39, %v3671_v2  ;;  %v1308_v8 = vadd.f32 %v1276_v31, %v3712_v33  ;;  %v761_v24 = vld [vmem:[#allocation2 + $0xa8] sm:$0xff]  ;;  %v3816_v2 = vld [vmem:[#allocation2 + $0x152] sm:$0xff] }
 0x15f   : > { %4558 = vst [vmem:[#allocation58_spill] sm:$0xff] %v3790_v32  ;;  %v3812_v43 = vmul.f32 %v3197_v27, %v3590_v37  ;;  %v906_v33 = vmul.f32 %v3174_v3, %v3592_v35  ;;  %v1002_v41 = vmul.f32 %v3179_v7, %v3816_v2  ;;  %v1098_v39 = vmul.f32 %v3182_v12, %v3805_v60 }
 0x160   : > { %742 = vst [vmem:[#allocation2 + $0x171] sm:$0xff] %v3756_v25  ;;  %v3793_v56 = vmax.f32 %v599_v14, 0.0  ;;  %v1097_v14 = vmul.f32 %v3182_v12, %v3790_v32  ;;  %v1696_v31 = vadd.f32 %v1695_v19, %v4562_v42  ;;  %v1180_v38 = vmul.f32 %v3197_v27, %v3731_v44  ;;  %v762_v6 = vld [vmem:[#allocation2 + $0xb0] sm:$0xff] }
 0x161   : > { %743 = vst [vmem:[#allocation2 + $0x181] sm:$0xff] %v3779_v5  ;;  %v1470_v9 = vmul.f32 %v3214_v47, %v3731_v44  ;;  %v937_v32 = vadd.f32 %v3725_v0, %v808_v59  ;;  %v1083_v30 = vmul.f32 %v3182_v12, %v761_v24  ;;  %v892_v46 = vmul.f32 %v3174_v3, %v3747_v1  ;;  %v956_v4 = vld [vmem:[#allocation2 + $0xb2] sm:$0xff] }
 0x162   : > { %4560 = vst [vmem:[#allocation59_spill] sm:$0xff] %v3805_v60  ;;  %v1181_v60 = vmul.f32 %v3197_v27, %v3747_v1  ;;  %v1471_v19 = vmul.f32 %v3214_v47, %v3747_v1  ;;  %v4563_v42 = vmax.f32 %v3776_v15, 0.0  ;;  %v1373_v44 = vmul.f32 %v3207_v36, %v761_v24 }
 0x163   : > { %728 = vst [vmem:[#allocation2 + $0xc9] sm:$0xff] %v3793_v56  ;;  %v893_v0 = vmul.f32 %v3174_v3, %v3751_v21  ;;  %v3852_v59 = vmul.f32 %v3197_v27, %v3751_v21  ;;  %v795_v13 = vmul.f32 %v3172_v63, %v762_v6  ;;  %v3857_v1 = vmul.f32 %v3214_v47, %v3751_v21 }
 0x164   : > { %4561 = vst [vmem:[#allocation60_spill] sm:$0xff] %v3816_v2  ;;  %v3843_v54 = vadd.f32 %v1696_v31, %v4563_v42  ;;  %v938_v15 = vadd.f32 %v906_v33, %v809_v45  ;;  %v1003_v31 = vmul.f32 %v3179_v7, %v3846_v57  ;;  %v955_v42 = vld [vmem:[#allocation2 + $0xaa] sm:$0xff]  ;;  %v1033_v26 = vadd.f32 %v3765_v11, %v3761_v22  ;;  %v2472_v2 = vld [vmem:[#allocation9 + $0x18] sm:$0xff] }
 0x165   : > { %744 = vst [vmem:[#allocation2 + $0x189] sm:$0xff] %v3781_v61  ;;  %v601_v37 = vpop.f32.mrf.mxu0  ;;  %v3864_v18 = vadd.f32 %v1002_v41, %v937_v32  ;;  %v3866_v55 = vadd.f32 %v1097_v14, %v1032_v17  ;;  %v794_v53 = vmul.f32 %v3172_v63, %v761_v24  ;;  %v1115_v20 = vadd.f32 %v1083_v30, %v1018_v62  ;;  %v763_v17 = vld [vmem:[#allocation2 + $0xc0] sm:$0xff] }
 0x166   : > { %4564 = vst [vmem:[#allocation61_spill] sm:$0xff] %v3843_v54  ;;  %v1084_v54 = vmul.f32 %v3182_v12, %v762_v6  ;;  %v1374_v21 = vmul.f32 %v3207_v36, %v762_v6  ;;  %v3872_v45 = vmul.f32 %v3197_v27, %v3592_v35  ;;  %v1405_v33 = vadd.f32 %v1373_v44, %v1307_v34  ;;  %v2473_v62 = vld [vmem:[#allocation9 + $0x20] sm:$0xff] }
 0x167   : > { %v894_v57 = vmul.f32 %v3174_v3, %v3793_v56  ;;  %v3878_v22 = vmul.f32 %v3197_v27, %v3749_v10  ;;  %v3882_v32 = vmul.f32 %v3197_v27, %v3756_v25  ;;  %v924_v30 = vadd.f32 %v892_v46, %v795_v13  ;;  %1802 = vmatpush.bf16.msrb.mxu1 %v2473_v62 }
 0x168   : > { %v988_v6 = vmul.f32 %v3179_v7, %v955_v42  ;;  %v1277_v11 = vmul.f32 %v3199_v28, %v955_v42  ;;  %v3888_v24 = vmul.f32 %v3197_v27, %v3793_v56  ;;  %v1116_v34 = vadd.f32 %v1084_v54, %v1019_v29 }
 0x169   : > { %4566 = vst [vmem:[#allocation63_spill] sm:$0xff] %v3878_v22  ;;  %v1567_v14 = vmul.f32 %v3370_v50, %v955_v42  ;;  %v3893_v41 = vmul.f32 %v3214_v47, %v3793_v56  ;;  %v3895_v44 = vadd.f32 %v1003_v31, %v938_v15  ;;  %v923_v13 = vadd.f32 %v891_v23, %v794_v53 }
 0x16a   : > { %4567 = vst [vmem:[#allocation64_spill] sm:$0xff] %v3882_v32  ;;  %v1212_v46 = vadd.f32 %v1180_v38, %v1115_v20  ;;  %v989_v35 = vmul.f32 %v3179_v7, %v956_v4  ;;  %v1406_v32 = vadd.f32 %v1374_v21, %v1308_v8  ;;  %v1502_v22 = vadd.f32 %v1470_v9, %v1405_v33  ;;  %v764_v29 = vld [vmem:[#allocation2 + $0xc8] sm:$0xff]  ;;  %v2624_v9 = vld [vmem:[%s4463_s2] ss:$0 sm:$0xff] }
 0x16b   : > { %v1278_v58 = vmul.f32 %v3199_v28, %v956_v4  ;;  %v796_v54 = vmul.f32 %v3172_v63, %v763_v17  ;;  %v3900_v51 = vadd.f32 %v1098_v39, %v1033_v26  ;;  %v1020_v56 = vadd.f32 %v988_v6, %v923_v13  ;;  %v3907_v21 = vld [vmem:[#allocation2 + $0x168] sm:$0xff]  ;;  %1803 = vmatpush.bf16.msrb.mxu1 %v2472_v2  ;;  %v3914_v6 = vld [vmem:[#allocation2 + $0x170] sm:$0xff] }
 0x16c   : > { %v1021_v47 = vadd.f32 %v989_v35, %v924_v30  ;;  %v1309_v15 = vadd.f32 %v1277_v11, %v1212_v46  ;;  %v1568_v53 = vmul.f32 %v3370_v50, %v956_v4  ;;  %v1213_v20 = vadd.f32 %v1181_v60, %v1116_v34  ;;  %v957_v35 = vld [vmem:[#allocation2 + $0xc2] sm:$0xff]  ;;  %v2471_v4 = vld [vmem:[#allocation9 + $0x10] sm:$0xff] }
 0x16d   : > { %v603_v42 = vpop.f32.mrf.mxu0  ;;  %v1599_v23 = vadd.f32 %v1567_v14, %v1502_v22  ;;  %v1085_v8 = vmul.f32 %v3182_v12, %v763_v17  ;;  %v602_v38 = vadd.f32 %v2624_v9, %v601_v37  ;;  %v1503_v31 = vadd.f32 %v1471_v19, %v1406_v32  ;;  %v3918_v19 = vld [vmem:[#allocation2 + $0xca] sm:$0xff] }
 0x16e   : > { %v1375_v26 = vmul.f32 %v3207_v36, %v763_v17  ;;  %v797_v39 = vmul.f32 %v3172_v63, %v764_v29  ;;  %v604_v33 = vadd.f32 %v2624_v9, %v603_v42  ;;  %v925_v60 = vadd.f32 %v893_v0, %v796_v54  ;;  %v2470_v42 = vld [vmem:[#allocation9 + $0x8] sm:$0xff] }
 0x16f   : > { %v1086_v22 = vmul.f32 %v3182_v12, %v764_v29  ;;  %v3912_v30 = vmax.f32 %v602_v38, 0.0  ;;  %v810_v37 = vmul.f32 %v3172_v63, %v3907_v21  ;;  %v811_v11 = vmul.f32 %v3172_v63, %v3914_v6  ;;  %1804 = vmatpush.bf16.msrb.mxu1 %v2471_v4  ;;  %v3935_v9 = vld [vmem:[#allocation2 + $0x16a] sm:$0xff] }
 0x170   : > { %v3920_v32 = vmax.f32 %v604_v33, 0.0  ;;  %v907_v2 = vmul.f32 %v3174_v3, %v3749_v10  ;;  %v908_v0 = vmul.f32 %v3174_v3, %v3756_v25  ;;  %v3929_v17 = vadd.f32 %v3434_v16, %v1599_v23 }
 0x171   : > { %v1117_v62 = vadd.f32 %v1085_v8, %v1020_v56  ;;  %v990_v34 = vmul.f32 %v3179_v7, %v957_v35  ;;  %v1376_v14 = vmul.f32 %v3207_v36, %v764_v29  ;;  %729 = vst [vmem:[#allocation2 + $0xd9] sm:$0xff] %v3912_v30  ;;  %v1600_v13 = vadd.f32 %v1568_v53, %v1503_v31  ;;  %v3939_v8 = vld [vmem:[#allocation2 + $0x172] sm:$0xff]  ;;  %v3957_v31 = vld [vmem:[#allocation2 + $0x188] sm:$0xff] }
 0x172   : > { %v1407_v46 = vadd.f32 %v1375_v26, %v1309_v15  ;;  %v926_v54 = vadd.f32 %v894_v57, %v797_v39  ;;  %730 = vst [vmem:[#allocation2 + $0xe1] sm:$0xff] %v3920_v32  ;;  %v1310_v38 = vadd.f32 %v1278_v58, %v1213_v20  ;;  %v991_v23 = vmul.f32 %v3179_v7, %v3918_v19 }
 0x173   : > { %v939_v56 = vadd.f32 %v907_v2, %v810_v37  ;;  %v1004_v29 = vmul.f32 %v3179_v7, %v3935_v9  ;;  %v1118_v33 = vadd.f32 %v1086_v22, %v1021_v47  ;;  %v1569_v15 = vmul.f32 %v3370_v50, %v957_v35  ;;  %1805 = vmatpush.bf16.msrb.mxu1 %v2470_v42  ;;  %v2469_v22 = vld [vmem:[#allocation9] sm:$0xff] }
 0x174   : > { %v940_v57 = vadd.f32 %v908_v0, %v811_v11  ;;  %v1005_v53 = vmul.f32 %v3179_v7, %v3939_v8  ;;  %v1214_v58 = vadd.f32 %v3852_v59, %v1117_v62  ;;  %v1022_v20 = vadd.f32 %v990_v34, %v925_v60  ;;  %v3953_v11 = vld [vmem:[#allocation2 + $0x180] sm:$0xff] }
 0x175   : > { %v1408_v26 = vadd.f32 %v1376_v14, %v1310_v38  ;;  %v3949_v39 = vadd.f32 %v3434_v16, %v1600_v13  ;;  %v1504_v4 = vadd.f32 %v3857_v1, %v1407_v46  ;;  %v1023_v37 = vadd.f32 %v991_v23, %v926_v54 }
 0x176   : > { %v1279_v47 = vmul.f32 %v3199_v28, %v957_v35  ;;  %v1280_v2 = vmul.f32 %v3199_v28, %v3918_v19  ;;  %v1036_v0 = vadd.f32 %v1004_v29, %v939_v56  ;;  %v1101_v59 = vmul.f32 %v3182_v12, %v3953_v11 }
 0x177   : > { %v3963_v60 = vadd.f32 %v3688_v52, %v3784_v49  ;;  %v1215_v1 = vadd.f32 %v3888_v24, %v1118_v33  ;;  %v1601_v35 = vadd.f32 %v1569_v15, %v1504_v4  ;;  %v1037_v34 = vadd.f32 %v1005_v53, %v940_v57  ;;  %1806 = vmatpush.bf16.msrb.mxu1 %v2469_v22 }
 0x178   : > { %v765_v62 = vld [vmem:[#allocation2 + $0xd8] sm:$0xff]  ;;  %v1102_v14 = vmul.f32 %v3182_v12, %v3957_v31  ;;  %v1505_v13 = vadd.f32 %v3893_v41, %v1408_v26  ;;  %v895_v54 = vmul.f32 %v3174_v3, %v3912_v30  ;;  %v896_v52 = vmul.f32 %v3174_v3, %v3920_v32 }
 0x179   : > { %4568 = vst [vmem:[#allocation65_spill] sm:$0xff] %v3963_v60  ;;  %v798_v46 = vmul.f32 %v3172_v63, %v765_v62  ;;  %v766_v42 = vld [vmem:[#allocation2 + $0xe0] sm:$0xff]  ;;  %v1099_v41 = vmul.f32 %v3182_v12, %v3907_v21  ;;  %v1198_v56 = vmul.f32 %v3197_v27, %v3779_v5  ;;  %v1087_v33 = vmul.f32 %v3182_v12, %v765_v62 }
 0x17a   : > { %v959_v49 = vld [vmem:[#allocation2 + $0xda] sm:$0xff]  ;;  %v3974_v38 = vld [vmem:[#allocation2 + $0xe2] sm:$0xff]  ;;  %v799_v24 = vmul.f32 %v3172_v63, %v766_v42  ;;  %v1133_v15 = vadd.f32 %v1101_v59, %v1036_v0  ;;  %v1199_v3 = vmul.f32 %v3197_v27, %v3781_v61  ;;  %v1088_v53 = vmul.f32 %v3182_v12, %v766_v42 }
 0x17b   : > { %v992_v23 = vmul.f32 %v3179_v7, %v959_v49  ;;  %v927_v29 = vadd.f32 %v895_v54, %v798_v46  ;;  %v993_v63 = vmul.f32 %v3179_v7, %v3974_v38  ;;  %v1134_v26 = vadd.f32 %v1102_v14, %v1037_v34 }
 0x17c   : > { %v928_v57 = vadd.f32 %v896_v52, %v799_v24  ;;  %v1311_v4 = vadd.f32 %v1279_v47, %v1214_v58  ;;  %v1570_v22 = vmul.f32 %v3370_v50, %v3918_v19  ;;  %v1100_v46 = vmul.f32 %v3182_v12, %v3914_v6 }
 0x17d   : > { %v1024_v60 = vadd.f32 %v992_v23, %v927_v29  ;;  %v1668_v0 = vmax.f32 %v3949_v39, 0.0  ;;  %v1312_v59 = vadd.f32 %v1280_v2, %v1215_v1  ;;  %v3994_v54 = vadd.f32 %v3434_v16, %v1601_v35  ;;  %v4569_v35 = vld [vmem:[#allocation21_spill] sm:$0xff] }
 0x17e   : > { %v1025_v52 = vadd.f32 %v993_v63, %v928_v57  ;;  %v1119_v24 = vadd.f32 %v1087_v33, %v1022_v20  ;;  %v1131_v34 = vadd.f32 %v1099_v41, %v3864_v18  ;;  %v3998_v58 = vadd.f32 %v1198_v56, %v1133_v15  ;;  %v4570_v41 = vld [vmem:[#allocation23_spill] sm:$0xff]  ;;  %v4572_v33 = vld [vmem:[#allocation60_spill] sm:$0xff] }
 0x17f   : > { %v1121_v7 = vadd.f32 %v3400_v40, %v1024_v60  ;;  %v1602_v47 = vadd.f32 %v1570_v22, %v1505_v13  ;;  %v1120_v19 = vadd.f32 %v1088_v53, %v1023_v37  ;;  %v4001_v23 = vadd.f32 %v1199_v3, %v1134_v26  ;;  %v4574_v15 = vld [vmem:[#allocation20_spill] sm:$0xff] }
 0x180   : > { %v1122_v14 = vadd.f32 %v3454_v48, %v1025_v52  ;;  %v1184_v12 = vmul.f32 %v3197_v27, %v3912_v30  ;;  %v1185_v2 = vmul.f32 %v3197_v27, %v3920_v32  ;;  %v1132_v20 = vadd.f32 %v1100_v46, %v3895_v44  ;;  %v4571_v27 = vld [vmem:[#allocation63_spill] sm:$0xff]  ;;  %v4575_v3 = vld [vmem:[#allocation64_spill] sm:$0xff] }
 0x181   : > { %v1226_v40 = vadd.f32 %v3812_v43, %v3866_v55  ;;  %v1377_v18 = vmul.f32 %v3207_v36, %v765_v62  ;;  %v1281_v60 = vmul.f32 %v3199_v28, %v959_v49  ;;  %v1378_v37 = vmul.f32 %v3207_v36, %v766_v42  ;;  %v4573_v43 = vld [vmem:[#allocation62_spill] sm:$0xff] }
 0x182   : > { %v1227_v48 = vadd.f32 %v3872_v45, %v3900_v51  ;;  %v1216_v1 = vadd.f32 %v1184_v12, %v1119_v24  ;;  %v1218_v13 = vadd.f32 %v4569_v35, %v1121_v7  ;;  %v1219_v56 = vadd.f32 %v4570_v41, %v1122_v14  ;;  %v4576_v24 = vld [vmem:[#allocation27_spill] sm:$0xff]  ;;  %v4580_v35 = vld [vmem:[#allocation42_spill] sm:$0xff]  ;;  %v4582_v41 = vld [vmem:[#allocation57_spill] sm:$0xff] }
 0x183   : > { %v1228_v29 = vadd.f32 %v4571_v27, %v1131_v34  ;;  %v1217_v44 = vadd.f32 %v1185_v2, %v1120_v19  ;;  %v1291_v55 = vmul.f32 %v3199_v28, %v4572_v33  ;;  %v1292_v62 = vmul.f32 %v3199_v28, %v4573_v43 }
 0x184   : > { %v1293_v42 = vmul.f32 %v3199_v28, %v3935_v9  ;;  %v1474_v51 = vmul.f32 %v4574_v15, %v3912_v30  ;;  %v1475_v45 = vmul.f32 %v4574_v15, %v3920_v32  ;;  %v1229_v57 = vadd.f32 %v4575_v3, %v1132_v20  ;;  %v4577_v30 = vld [vmem:[#allocation28_spill] sm:$0xff] }
 0x185   : > { %v1294_v63 = vmul.f32 %v3199_v28, %v3939_v8  ;;  %v1409_v53 = vadd.f32 %v1377_v18, %v1311_v4  ;;  %v1282_v26 = vmul.f32 %v3199_v28, %v3974_v38  ;;  %v1313_v22 = vadd.f32 %v1281_v60, %v1216_v1  ;;  %v4578_v60 = vld [vmem:[#allocation25_spill] sm:$0xff] }
 0x186   : > { %v1410_v46 = vadd.f32 %v1378_v37, %v1312_v59  ;;  %v4034_v52 = vadd.f32 %v3434_v16, %v1602_v47  ;;  %v1315_v7 = vadd.f32 %v4576_v24, %v1218_v13  ;;  %v1316_v34 = vadd.f32 %v4577_v30, %v1219_v56  ;;  %v4587_v24 = vld [vmem:[#allocation51_spill] sm:$0xff] }
 0x187   : > { %v1571_v32 = vmul.f32 %v3370_v50, %v959_v49  ;;  %v1314_v19 = vadd.f32 %v1282_v26, %v1217_v44  ;;  %v1323_v14 = vadd.f32 %v1291_v55, %v1226_v40  ;;  %v1324_v12 = vadd.f32 %v1292_v62, %v1227_v48  ;;  %v4579_v49 = vld [vmem:[#allocation41_spill] sm:$0xff]  ;;  %v4049_v48 = vld [vmem:[#allocation8 + $0x8] ss:$0 sm:$0xff] }
 0x188   : > { %v1325_v2 = vadd.f32 %v1293_v42, %v1228_v29  ;;  %v1326_v20 = vadd.f32 %v1294_v63, %v1229_v57  ;;  %v1389_v4 = vmul.f32 %v3207_v36, %v3907_v21  ;;  %v1390_v59 = vmul.f32 %v3207_v36, %v3914_v6  ;;  %v4581_v6 = vld [vmem:[#allocation47_spill] sm:$0xff] }
 0x189   : > { %v1391_v47 = vmul.f32 %v3207_v36, %v3953_v11  ;;  %v1506_v18 = vadd.f32 %v1474_v51, %v1409_v53  ;;  %v1411_v37 = vadd.f32 %v4578_v60, %v1313_v22  ;;  %v1507_v1 = vadd.f32 %v1475_v45, %v1410_v46  ;;  %v4583_v11 = vld [vmem:[#allocation34_spill] sm:$0xff]  ;;  %v4585_v53 = vld [vmem:[#allocation36_spill] sm:$0xff]  ;;  %v4586_v22 = vld [vmem:[#allocation37_spill] sm:$0xff] }
 0x18a   : > { %v1392_v50 = vmul.f32 %v3207_v36, %v3957_v31  ;;  %v1413_v40 = vadd.f32 %v4579_v49, %v1315_v7  ;;  %v1572_v21 = vmul.f32 %v4049_v48, %v3974_v38  ;;  %v1414_v13 = vadd.f32 %v4580_v35, %v1316_v34  ;;  %v4584_v45 = vld [vmem:[#allocation22_spill] sm:$0xff]  ;;  %v4588_v7 = vld [vmem:[#allocation48_spill] sm:$0xff] }
 0x18b   : > { %v1418_v56 = vadd.f32 %v4582_v41, %v4581_v6  ;;  %v1412_v27 = vadd.f32 %v4583_v11, %v1314_v19  ;;  %v1603_v29 = vadd.f32 %v1571_v32, %v1506_v18  ;;  %v1421_v44 = vadd.f32 %v1389_v4, %v1323_v14  ;;  %v4591_v32 = vld [vmem:[#allocation61_spill] sm:$0xff]  ;;  %v4097_v49 = vld [vmem:[%s4465_s4] ss:$0 sm:$0xff]  ;;  %v2629_v11 = vld [vmem:[#allocation2 + $0x112] sm:$0xff] }
 0x18c   : > { %v1422_v55 = vadd.f32 %v1390_v59, %v1324_v12  ;;  %v1423_v62 = vadd.f32 %v1391_v47, %v1325_v2  ;;  %v1424_v42 = vadd.f32 %v1392_v50, %v1326_v20  ;;  %v1486_v31 = vmul.f32 %v4574_v15, %v3749_v10  ;;  %v4589_v10 = vld [vmem:[#allocation49_spill] sm:$0xff]  ;;  %v2626_v47 = vld [vmem:[#allocation2 + $0xfa] sm:$0xff] }
 0x18d   : > { %v1487_v51 = vmul.f32 %v4574_v15, %v3756_v25  ;;  %v1508_v38 = vadd.f32 %v4584_v45, %v1411_v37  ;;  %v1604_v3 = vadd.f32 %v1572_v21, %v1507_v1  ;;  %v1488_v57 = vmul.f32 %v4574_v15, %v3779_v5  ;;  %v4593_v1 = vld [vmem:[#allocation35_spill] sm:$0xff]  ;;  %v2628_v35 = vld [vmem:[#allocation2 + $0x10a] sm:$0xff] }
 0x18e   : > { %v1489_v63 = vmul.f32 %v4574_v15, %v3781_v61  ;;  %v1510_v26 = vadd.f32 %v4585_v53, %v1413_v40  ;;  %v1511_v46 = vadd.f32 %v4586_v22, %v1414_v13  ;;  %v1514_v30 = vadd.f32 %v4588_v7, %v4587_v24  ;;  %v4592_v61 = vld [vmem:[#allocation24_spill] sm:$0xff]  ;;  %v4594_v40 = vld [vmem:[#allocation53_spill] sm:$0xff] }
 0x18f   : > { %v4071_v34 = vadd.f32 %v4589_v10, %v1418_v56  ;;  %v4590_v25 = vmax.f32 %v3929_v17, 0.0  ;;  %v1669_v14 = vmax.f32 %v3994_v54, 0.0  ;;  %v4077_v5 = vadd.f32 %v1486_v31, %v1421_v44  ;;  %v4599_v7 = vld [vmem:[#allocation65_spill] sm:$0xff]  ;;  %v4600_v10 = vld [vmem:[#allocation59_spill] sm:$0xff] }
 0x190   : > { %v4079_v12 = vadd.f32 %v1487_v51, %v1422_v55  ;;  %v1509_v2 = vadd.f32 %v4592_v61, %v1412_v27  ;;  %v4083_v20 = vadd.f32 %v3434_v16, %v1603_v29  ;;  %v4085_v4 = vadd.f32 %v1488_v57, %v1423_v62  ;;  %v4595_v29 = vld [vmem:[#allocation54_spill] sm:$0xff] }
 0x191   : > { %v1698_v19 = vadd.f32 %v4591_v32, %v4590_v25  ;;  %v4087_v59 = vadd.f32 %v1489_v63, %v1424_v42  ;;  %v1574_v18 = vmul.f32 %v2626_v47, %v4049_v48  ;;  %v1670_v37 = vmax.f32 %v4034_v52, 0.0  ;;  %v4596_v51 = vld [vmem:[#allocation58_spill] sm:$0xff]  ;;  %v4601_v32 = vld [vmem:[#allocation43_spill] sm:$0xff] }
 0x192   : > { %v1605_v50 = vadd.f32 %v4593_v1, %v1508_v38  ;;  %v4100_v16 = vadd.f32 %v4097_v49, %v1604_v3  ;;  %v1289_v21 = vmul.f32 %v3199_v28, %v4594_v40  ;;  %v1575_v13 = vmul.f32 %v2628_v35, %v4049_v48  ;;  %v4597_v38 = vld [vmem:[#allocation46_spill] sm:$0xff] }
 0x193   : > { %v1699_v60 = vadd.f32 %v1698_v19, %v1668_v0  ;;  %v1606_v41 = vadd.f32 %v1574_v18, %v1509_v2  ;;  %v1671_v56 = vmax.f32 %v4083_v20, 0.0  ;;  %v1576_v27 = vmul.f32 %v2629_v11, %v4049_v48  ;;  %v4598_v57 = vld [vmem:[#allocation38_spill] sm:$0xff]  ;;  %v4602_v18 = vld [vmem:[#allocation39_spill] sm:$0xff] }
 0x194   : > { %v1290_v44 = vmul.f32 %v3199_v28, %v4595_v29  ;;  %v1672_v62 = vmax.f32 %v4100_v16, 0.0  ;;  %v1607_v42 = vadd.f32 %v1575_v13, %v1510_v26  ;;  %v4115_v31 = vadd.f32 %v4097_v49, %v1605_v50  ;;  %v4603_v1 = vld [vmem:[#allocation26_spill] sm:$0xff]  ;;  %v4614_v16 = vld [vmem:[#allocation44_spill] sm:$0xff] }
 0x195   : > { %v1700_v6 = vadd.f32 %v1699_v60, %v1669_v14  ;;  %v1387_v45 = vmul.f32 %v3207_v36, %v4596_v51  ;;  %v1321_v3 = vadd.f32 %v1289_v21, %v4597_v38  ;;  %v1577_v63 = vmul.f32 %v4049_v48, %v4598_v57  ;;  %v1263_v57 = vld [vmem:[#allocation2 + $0x18a] sm:$0xff] }
 0x196   : > { %v1608_v22 = vadd.f32 %v1576_v27, %v1511_v46  ;;  %v4125_v24 = vadd.f32 %v4097_v49, %v1606_v41  ;;  %v1322_v26 = vadd.f32 %v1290_v44, %v4599_v7  ;;  %v1388_v25 = vmul.f32 %v3207_v36, %v4600_v10  ;;  %v4604_v41 = vld [vmem:[#allocation40_spill] sm:$0xff] }
 0x197   : > { %v1701_v55 = vadd.f32 %v1700_v6, %v1670_v37  ;;  %v1578_v19 = vmul.f32 %v4049_v48, %v4601_v32  ;;  %v4135_v2 = vadd.f32 %v4097_v49, %v1607_v42  ;;  %v1673_v47 = vmax.f32 %v4115_v31, 0.0  ;;  %v1262_v27 = vld [vmem:[#allocation2 + $0x182] sm:$0xff] }
 0x198   : > { %v1419_v46 = vadd.f32 %v1387_v45, %v1321_v3  ;;  %v1484_v60 = vmul.f32 %v4574_v15, %v4602_v18  ;;  %v1609_v50 = vadd.f32 %v1577_v63, %v4603_v1  ;;  %v1579_v21 = vmul.f32 %v4049_v48, %v4594_v40 }
 0x199   : > { %v1702_v53 = vadd.f32 %v1701_v55, %v1671_v56  ;;  %v4144_v35 = vadd.f32 %v4097_v49, %v1608_v22  ;;  %v1674_v13 = vmax.f32 %v4125_v24, 0.0  ;;  %v1420_v6 = vadd.f32 %v1388_v25, %v1322_v26  ;;  %v4605_v55 = vld [vmem:[#allocation32_spill] sm:$0xff]  ;;  %v4618_v24 = vld [vmem:[#allocation50_spill] sm:$0xff] }
 0x19a   : > { %v1485_v11 = vmul.f32 %v4574_v15, %v4604_v41  ;;  %v1580_v44 = vmul.f32 %v4049_v48, %v4595_v29  ;;  %v1610_v42 = vadd.f32 %v1578_v19, %v4605_v55  ;;  %v1675_v51 = vmax.f32 %v4135_v2, 0.0  ;;  %v2630_v19 = vld [vmem:[#allocation2] sm:$0xff] }
 0x19b   : > { %v1703_v61 = vadd.f32 %v1702_v53, %v1672_v62  ;;  %v1295_v45 = vmul.f32 %v3199_v28, %v1262_v27  ;;  %v1516_v38 = vadd.f32 %v1484_v60, %v1419_v46  ;;  %v1581_v3 = vmul.f32 %v4049_v48, %v4572_v33  ;;  %v1457_v46 = vld [vmem:[#allocation2 + $0x199] sm:$0xff] }
 0x19c   : > { %v1611_v63 = vadd.f32 %v1579_v21, %v1514_v30  ;;  %v4159_v53 = vadd.f32 %v4097_v49, %v1609_v50  ;;  %v1676_v29 = vmax.f32 %v4144_v35, 0.0  ;;  %v1296_v7 = vmul.f32 %v3199_v28, %v1263_v57  ;;  %v1458_v50 = vld [vmem:[#allocation2 + $0x1a1] sm:$0xff]  ;;  %v4622_v35 = vld [vmem:[#allocation55_spill] sm:$0xff] }
 0x19d   : > { %v1704_v40 = vadd.f32 %v1703_v61, %v1673_v47  ;;  %v1517_v26 = vadd.f32 %v1485_v11, %v1420_v6  ;;  %v1582_v10 = vmul.f32 %v4049_v48, %v4573_v43  ;;  %v1612_v25 = vadd.f32 %v1580_v44, %v4071_v34  ;;  %v1554_v55 = vld [vmem:[#allocation2 + $0x19a] sm:$0xff] }
 0x19e   : > { %v4169_v33 = vadd.f32 %v4097_v49, %v1610_v42  ;;  %v1327_v32 = vadd.f32 %v1295_v45, %v3998_v58  ;;  %v1393_v61 = vmul.f32 %v2630_v19, %v3207_v36  ;;  %v1583_v28 = vmul.f32 %v4049_v48, %v3935_v9 }
 0x19f   : > { %v1705_v22 = vadd.f32 %v1704_v40, %v1674_v13  ;;  %v1613_v18 = vadd.f32 %v1581_v3, %v1516_v38  ;;  %v4178_v43 = vadd.f32 %v4097_v49, %v1611_v63  ;;  %v1677_v34 = vmax.f32 %v4159_v53, 0.0  ;;  %v1555_v63 = vld [vmem:[#allocation2 + $0x1a2] sm:$0xff] }
 0x1a0   : > { %v1328_v1 = vadd.f32 %v1296_v7, %v4001_v23  ;;  %v1584_v58 = vmul.f32 %v4049_v48, %v3939_v8  ;;  %v1614_v36 = vadd.f32 %v1582_v10, %v1517_v26  ;;  %v4187_v21 = vadd.f32 %v4097_v49, %v1612_v25 }
 0x1a1   : > { %v1706_v30 = vadd.f32 %v1705_v22, %v1675_v51  ;;  %v1678_v9 = vmax.f32 %v4169_v33, 0.0  ;;  %v1425_v41 = vadd.f32 %v1393_v61, %v1327_v32  ;;  %v1490_v11 = vmul.f32 %v4574_v15, %v1457_v46 }
 0x1a2   : > { %v1585_v44 = vmul.f32 %v4049_v48, %v1262_v27  ;;  %v1615_v23 = vadd.f32 %v1583_v28, %v4077_v5  ;;  %v4196_v8 = vadd.f32 %v4097_v49, %v1613_v18  ;;  %v1679_v42 = vmax.f32 %v4178_v43, 0.0  ;;  %v2484_v18 = vld [vmem:[#allocation11 + $0x38] sm:$0xff] }
 0x1a3   : > { %v1707_v60 = vadd.f32 %v1706_v30, %v1676_v29  ;;  %v1426_v45 = vadd.f32 %v1393_v61, %v1328_v1  ;;  %v1491_v38 = vmul.f32 %v4574_v15, %v1458_v50  ;;  %v1586_v3 = vmul.f32 %v4049_v48, %v1263_v57  ;;  %1878 = vmatpush.bf16.msra.mxu2 %v2484_v18 }
 0x1a4   : > { %v1616_v22 = vadd.f32 %v1584_v58, %v4079_v12  ;;  %v4205_v27 = vadd.f32 %v4097_v49, %v1614_v36  ;;  %v1680_v5 = vmax.f32 %v4187_v21, 0.0  ;;  %v1522_v26 = vadd.f32 %v1490_v11, %v1425_v41 }
 0x1a5   : > { %v1708_v6 = vadd.f32 %v1707_v60, %v1677_v34  ;;  %v1587_v10 = vmul.f32 %v4049_v48, %v1554_v55  ;;  %v1617_v25 = vadd.f32 %v1585_v44, %v4085_v4  ;;  %v4213_v15 = vadd.f32 %v4097_v49, %v1615_v23 }
 0x1a6   : > { %v1681_v57 = vmax.f32 %v4196_v8, 0.0  ;;  %v1523_v30 = vadd.f32 %v1491_v38, %v1426_v45  ;;  %v1588_v32 = vmul.f32 %v4049_v48, %v1555_v63  ;;  %v1618_v19 = vadd.f32 %v1586_v3, %v4087_v59  ;;  %v2483_v59 = vld [vmem:[#allocation11 + $0x30] sm:$0xff] }
 0x1a7   : > { %v1709_v40 = vadd.f32 %v1708_v6, %v1678_v9  ;;  %v4221_v61 = vadd.f32 %v4097_v49, %v1616_v22  ;;  %v1682_v28 = vmax.f32 %v4205_v27, 0.0  ;;  %v2933_v46 = vmov 256.0   ;;  %1879 = vmatpush.bf16.msra.mxu2 %v2483_v59  ;;  %v2478_v59 = vld [vmem:[#allocation11 + $0x8] sm:$0xff] }
 0x1a8   : > { %2620 = vrcp.f32 %v2933_v46  ;;  %v1619_v60 = vadd.f32 %v1587_v10, %v1522_v26  ;;  %v4227_v1 = vadd.f32 %v4097_v49, %v1617_v25  ;;  %v1683_v58 = vmax.f32 %v4213_v15, 0.0  ;;  %v2481_v26 = vld [vmem:[#allocation11 + $0x20] sm:$0xff]  ;;  %v2479_v46 = vld [vmem:[#allocation11 + $0x10] sm:$0xff] }
 0x1a9   : > { %v1710_v7 = vadd.f32 %v1709_v40, %v1679_v42  ;;  %v1620_v50 = vadd.f32 %v1588_v32, %v1523_v30  ;;  %v4233_v36 = vadd.f32 %v4097_v49, %v1618_v19  ;;  %v1684_v6 = vmax.f32 %v4221_v61, 0.0  ;;  %v2482_v40 = vld [vmem:[#allocation11 + $0x28] sm:$0xff]  ;;  %v2480_v30 = vld [vmem:[#allocation11 + $0x18] sm:$0xff] }
 0x1aa   : > { %v4239_v44 = vadd.f32 %v4097_v49, %v1619_v60  ;;  %v1685_v55 = vmax.f32 %v4227_v1, 0.0  ;;  %v4626_v33 = vmax.f32 %v3929_v17, 0.0 }
 0x1ab   : > { %v1711_v12 = vadd.f32 %v1710_v7, %v1680_v5  ;;  %v4245_v45 = vadd.f32 %v4097_v49, %v1620_v50  ;;  %v1686_v38 = vmax.f32 %v4233_v36, 0.0  ;;  %1880 = vmatpush.bf16.msra.mxu2 %v2482_v40  ;;  %v2631_v36 = vld [vmem:[%s3116_s26] sm:$0xff] }
 0x1ac   : > { %v1687_v22 = vmax.f32 %v4239_v44, 0.0  ;;  %v2632_v44 = vld [vmem:[%s3116_s26 + $0x70] sm:$0xff] }
 0x1ad   : > { %v1712_v4 = vadd.f32 %v1711_v12, %v1681_v57  ;;  %v1688_v10 = vmax.f32 %v4245_v45, 0.0 }
 0x1ae   : > { %v2621_v11 = vpop.eup %2620 }
 0x1af   : > { %v1713_v48 = vadd.f32 %v1712_v4, %v1682_v28  ;;  %v1727_v63 = vmul.f32 256.0, %v2621_v11  ;;  %1881 = vmatpush.bf16.msra.mxu2 %v2481_v26  ;;  %vm1731_vm0 = vweird.f32 %v2621_v11  ;;  %v2491_v26 = vld [vmem:[#allocation12 + $0x30] sm:$0xff] }
 0x1b1   : > { %v1714_v41 = vadd.f32 %v1713_v48, %v1683_v58  ;;  %v1728_v49 = vsub.f32 1.0, %v1727_v63  ;;  %v2477_v63 = vld [vmem:[#allocation11] sm:$0xff] }
 0x1b3   : > { %v1715_v23 = vadd.f32 %v1714_v41, %v1684_v6  ;;  %v1729_v19 = vmul.f32 %v2621_v11, %v1728_v49  ;;  %1882 = vmatpush.bf16.msra.mxu2 %v2480_v30  ;;  %v2489_v49 = vld [vmem:[#allocation12 + $0x20] sm:$0xff] }
 0x1b5   : > { %v1716_v3 = vadd.f32 %v1715_v23, %v1685_v55  ;;  %v1730_v60 = vadd.f32 %v2621_v11, %v1729_v19  ;;  %v2934_v19 = vmov 6.0  }
 0x1b6   : > { %2622 = vrcp.f32 %v2934_v19  ;;  %v4608_v19 = vld [vmem:[#allocation30_spill] sm:$0xff] }
 0x1b7   : > { %v1717_v7 = vadd.f32 %v1716_v3, %v1686_v38  ;;  %1883 = vmatpush.bf16.msra.mxu2 %v2479_v46  ;;  %v1732_v41 = vsel %vm1731_vm0, %v2621_v11, %v1730_v60  ;;  %v2487_v46 = vld [vmem:[#allocation12 + $0x10] sm:$0xff]  ;;  %v2486_v60 = vld [vmem:[#allocation12 + $0x8] sm:$0xff] }
 0x1b9   : > { %v1718_v25 = vadd.f32 %v1717_v7, %v1687_v22  ;;  %v2492_v7 = vld [vmem:[#allocation12 + $0x38] sm:$0xff] }
 0x1ba   : > { %2502 = vmatpush.bf16.msra.mxu3 %v2492_v7 }
 0x1bb   : > { %v1719_v12 = vadd.f32 %v1718_v25, %v1688_v10  ;;  %1884 = vmatpush.bf16.msra.mxu2 %v2478_v59  ;;  %v2490_v25 = vld [vmem:[#allocation12 + $0x28] sm:$0xff]  ;;  %v2485_v59 = vld [vmem:[#allocation12] sm:$0xff] }
 0x1bd   : > { %v1720_v32 = vrot.slane %v1719_v12, 4 }
 0x1be   : > { %2503 = vmatpush.bf16.msra.mxu3 %v2491_v26 }
 0x1bf   : > { %v1721_v4 = vadd.f32 %v1720_v32, %v1719_v12  ;;  %1885 = vmatpush.bf16.msra.mxu2 %v2477_v63 }
 0x1c1   : > { %v1722_v18 = vrot.slane %v1721_v4, 2 }
 0x1c2   : > { %2504 = vmatpush.bf16.msra.mxu3 %v2490_v25 }
 0x1c3   : > { %v1723_v48 = vadd.f32 %v1722_v18, %v1721_v4  ;;  %2018 = vmatpush.bf16.msrb.mxu2 %v2492_v7  ;;  %v2488_v4 = vld [vmem:[#allocation12 + $0x18] sm:$0xff]  ;;  %v2623_v18 = vpop.eup %2622 }
 0x1c4   : > { %vm1896_vm1 = vweird.f32 %v2623_v18 }
 0x1c5   : > { %v1724_v50 = vrot.slane %v1723_v48, 1 }
 0x1c6   : > { %2505 = vmatpush.bf16.msra.mxu3 %v2489_v49 }
 0x1c7   : > { %v1725_v23 = vadd.f32 %v1724_v50, %v1723_v48  ;;  %2019 = vmatpush.bf16.msrb.mxu2 %v2491_v26  ;;  %v1892_v48 = vmul.f32 6.0, %v2623_v18 }
 0x1c9   : > { %v1733_v40 = vmul.f32 %v1732_v41, %v1725_v23  ;;  %v1893_v50 = vsub.f32 1.0, %v1892_v48 }
 0x1ca   : > { %2506 = vmatpush.bf16.msra.mxu3 %v2488_v4 }
 0x1cb   : > { %v1734_v3 = vpack.c.bf16 %v1733_v40, %v1733_v40  ;;  %2020 = vmatpush.bf16.msrb.mxu2 %v2490_v25  ;;  %v1894_v41 = vmul.f32 %v2623_v18, %v1893_v50  ;;  %v4610_v50 = vld [vmem:[#allocation31_spill] sm:$0xff] }
 0x1cd   : > { %1807 = vmatmul.bf16.vlgmr.msrb.gmra.mxu1 %v1734_v3  ;;  %v1895_v23 = vadd.f32 %v2623_v18, %v1894_v41  ;;  %v4611_v41 = vmax.f32 %v4610_v50, 0.0 }
 0x1ce   : > { %2507 = vmatpush.bf16.msra.mxu3 %v2487_v46 }
 0x1cf   : > { %2021 = vmatpush.bf16.msrb.mxu2 %v2489_v49  ;;  %v1897_v3 = vsel %vm1896_vm1, %v2623_v18, %v1895_v23 }
 0x1d2   : > { %2508 = vmatpush.bf16.msra.mxu3 %v2486_v60 }
 0x1d3   : > { %2022 = vmatpush.bf16.msrb.mxu2 %v2488_v4  ;;  %v4609_v4 = vmax.f32 %v4608_v19, 0.0 }
 0x1d6   : > { %2509 = vmatpush.bf16.msra.mxu3 %v2485_v59 }
 0x1d7   : > { %2023 = vmatpush.bf16.msrb.mxu2 %v2487_v46 }
 0x1db   : > { %2024 = vmatpush.bf16.msrb.mxu2 %v2486_v60 }
 0x1df   : > { %2025 = vmatpush.bf16.msrb.mxu2 %v2485_v59 }
 0x24a   : > { %v1808_v11 = vpop.f32.mrf.mxu1 }
 0x24b   : > { %v1812_v12 = vmax.f32 %v1808_v11, 0.0 }
 0x24d   : > { %v1813_v30 = vpack.c.bf16 %v1812_v12, %v1812_v12  ;;  %v4606_v12 = vld [vmem:[#allocation29_spill] sm:$0xff] }
 0x24f   : > { %1886 = vmatmul.bf16.vlgmr.msra.gmra.mxu2 %v1813_v30  ;;  %v4607_v30 = vmax.f32 %v4606_v12, 0.0 }
 0x252   : > { %v1810_v32 = vpop.f32.mrf.mxu1 }
 0x2d2   : > { %v1887_v40 = vpop.f32.mrf.mxu2 }
 0x2d3   : > { %v1888_v63 = vadd.f32 3.0, %v1887_v40  ;;  %v4612_v40 = vld [vmem:[#allocation33_spill] sm:$0xff] }
 0x2d5   : > { %v1898_v7 = vmul.f32 %v1897_v3, %v1888_v63  ;;  %v4613_v3 = vmax.f32 %v4612_v40, 0.0 }
 0x2d7   : > { %v1899_v26 = vmax.f32 %v1898_v7, 0.0 }
 0x2d9   : > { %v1900_v25 = vmin.f32 %v1899_v26, 1.0 }
 0x2da   : > { %v1889_v49 = vpop.f32.mrf.mxu2 }
 0x2db   : > { %v1901_v11 = vperm.slane %v1900_v25, 0  ;;  %v4616_v49 = vld [vmem:[#allocation45_spill] sm:$0xff] }
 0x2dc   : > { %v4617_v12 = vmax.f32 %v4616_v49, 0.0 }
 0x2dd   : > { %v1902_v32 = vmul.f32 %v1901_v11, %v4607_v30  ;;  %v1903_v46 = vmul.f32 %v1901_v11, %v4609_v4  ;;  %v1916_v60 = vmul.f32 %v1901_v11, %v1671_v56  ;;  %v1917_v48 = vmul.f32 %v1901_v11, %v1672_v62 }
 0x2de   : > { %v1904_v23 = vmul.f32 %v1901_v11, %v4611_v41  ;;  %v1905_v63 = vmul.f32 %v1901_v11, %v4613_v3  ;;  %v1918_v7 = vmul.f32 %v1901_v11, %v1673_v47  ;;  %v1919_v20 = vmul.f32 %v1901_v11, %v1674_v13  ;;  %v4624_v41 = vld [vmem:[#allocation56_spill] sm:$0xff] }
 0x2df   : > { %v1934_v59 = vpack.c.bf16 %v1903_v46, %v1902_v32  ;;  %v1941_v18 = vpack.c.bf16 %v1917_v48, %v1916_v60  ;;  %v4615_v62 = vmax.f32 %v4614_v16, 0.0  ;;  %v1907_v30 = vmul.f32 %v1901_v11, %v4617_v12  ;;  %v4620_v46 = vld [vmem:[#allocation52_spill] sm:$0xff]  ;;  %v2634_v16 = vld [vmem:[%s3116_s26 + $0x78] sm:$0xff] }
 0x2e0   : > { %v1935_v56 = vpack.c.bf16 %v1905_v63, %v1904_v23  ;;  %v1942_v26 = vpack.c.bf16 %v1919_v20, %v1918_v7  ;;  %v1920_v32 = vmul.f32 %v1901_v11, %v1675_v51  ;;  %v1921_v31 = vmul.f32 %v1901_v11, %v1676_v29 }
 0x2e1   : > { %2026 = vmatmul.bf16.vlgmr.msrb.gmra.mxu2 %v1934_v59  ;;  %2061 = vmatmul.bf16.vlgmr.msra.gmra.mxu3 %v1941_v18  ;;  %v1906_v25 = vmul.f32 %v1901_v11, %v4615_v62  ;;  %v4619_v13 = vmax.f32 %v4618_v24, 0.0  ;;  %v4621_v60 = vmax.f32 %v4620_v46, 0.0  ;;  %v1922_v59 = vmul.f32 %v1901_v11, %v1677_v34 }
 0x2e2   : > { %v1943_v19 = vpack.c.bf16 %v1921_v31, %v1920_v32  ;;  %v1923_v2 = vmul.f32 %v1901_v11, %v1678_v9  ;;  %v4623_v29 = vmax.f32 %v4622_v35, 0.0  ;;  %v4625_v23 = vmax.f32 %v4624_v41, 0.0  ;;  %v2635_v32 = vld [vmem:[%s3116_s26 + $0x10] sm:$0xff] }
 0x2e3   : > { %v1936_v47 = vpack.c.bf16 %v1907_v30, %v1906_v25  ;;  %v1908_v4 = vmul.f32 %v1901_v11, %v4619_v13  ;;  %v1909_v48 = vmul.f32 %v1901_v11, %v4621_v60  ;;  %v1924_v3 = vmul.f32 %v1901_v11, %v1679_v42  ;;  %v2637_v60 = vld [vmem:[%s3116_s26 + $0x18] sm:$0xff] }
 0x2e4   : > { %v1944_v18 = vpack.c.bf16 %v1923_v2, %v1922_v59  ;;  %v1910_v50 = vmul.f32 %v1901_v11, %v4623_v29  ;;  %v1911_v40 = vmul.f32 %v1901_v11, %v4625_v23  ;;  %v1925_v53 = vmul.f32 %v1901_v11, %v1680_v5  ;;  %v2638_v59 = vld [vmem:[%s3116_s26 + $0x88] sm:$0xff]  ;;  %v2640_v23 = vld [vmem:[%s3116_s26 + $0x90] sm:$0xff] }
 0x2e5   : > { %v1937_v51 = vpack.c.bf16 %v1909_v48, %v1908_v4  ;;  %v1912_v9 = vmul.f32 %v1901_v11, %v4626_v33  ;;  %v1913_v7 = vmul.f32 %v1901_v11, %v1668_v0  ;;  %v1926_v20 = vmul.f32 %v1901_v11, %v1681_v57  ;;  %v4325_v57 = vld [vmem:[%s4469_s8] ss:$0 sm:$0xff]  ;;  %v2641_v33 = vld [vmem:[%s3116_s26 + $0x28] sm:$0xff] }
 0x2e6   : > { %v1938_v34 = vpack.c.bf16 %v1911_v40, %v1910_v50  ;;  %v1945_v63 = vpack.c.bf16 %v1925_v53, %v1924_v3  ;;  %v1927_v43 = vmul.f32 %v1901_v11, %v1682_v28  ;;  %v1914_v21 = vmul.f32 %v1901_v11, %v1669_v14  ;;  %v2639_v50 = vld [vmem:[%s3116_s26 + $0x20] sm:$0xff] }
 0x2e7   : > { %v1939_v42 = vpack.c.bf16 %v1913_v7, %v1912_v9  ;;  %v1915_v17 = vmul.f32 %v1901_v11, %v1670_v37  ;;  %v1928_v39 = vmul.f32 %v1901_v11, %v1683_v58  ;;  %v1929_v0 = vmul.f32 %v1901_v11, %v1684_v6  ;;  %v2642_v7 = vld [vmem:[%s3116_s26 + $0x98] sm:$0xff] }
 0x2e8   : > { %v1930_v27 = vmul.f32 %v1901_v11, %v1685_v55  ;;  %v1931_v54 = vmul.f32 %v1901_v11, %v1686_v38  ;;  %v1932_v14 = vmul.f32 %v1901_v11, %v1687_v22  ;;  %v1933_v37 = vmul.f32 %v1901_v11, %v1688_v10  ;;  %v2633_v11 = vld [vmem:[%s3116_s26 + $0x8] sm:$0xff] }
 0x2e9   : > { %v1940_v8 = vpack.c.bf16 %v1915_v17, %v1914_v21  ;;  %v1947_v5 = vpack.c.bf16 %v1929_v0, %v1928_v39  ;;  %v2643_v17 = vld [vmem:[%s3116_s26 + $0x30] sm:$0xff]  ;;  %v2644_v0 = vld [vmem:[%s3116_s26 + $0xa0] sm:$0xff] }
 0x2ea   : > { %v1948_v52 = vpack.c.bf16 %v1931_v54, %v1930_v27  ;;  %v1949_v15 = vpack.c.bf16 %v1933_v37, %v1932_v14  ;;  %v2645_v14 = vld [vmem:[%s3116_s26 + $0x38] sm:$0xff] }
 0x2f1   : > { %2031 = vmatmul.bf16.gmra.mxu2 %v1935_v56  ;;  %2066 = vmatmul.bf16.gmra.mxu3 %v1942_v26  ;;  %v1946_v56 = vpack.c.bf16 %v1927_v43, %v1926_v20 }
 0x301   : > { %2036 = vmatmul.bf16.gmra.mxu2 %v1936_v47  ;;  %2071 = vmatmul.bf16.gmra.mxu3 %v1943_v19  ;;  %v2636_v47 = vld [vmem:[%s3116_s26 + $0x80] sm:$0xff] }
 0x311   : > { %2041 = vmatmul.bf16.gmra.mxu2 %v1937_v51  ;;  %2076 = vmatmul.bf16.gmra.mxu3 %v1944_v18 }
 0x321   : > { %2046 = vmatmul.bf16.gmra.mxu2 %v1938_v34  ;;  %2081 = vmatmul.bf16.gmra.mxu3 %v1945_v63 }
 0x331   : > { %2051 = vmatmul.bf16.gmra.mxu2 %v1939_v42  ;;  %2086 = vmatmul.bf16.gmra.mxu3 %v1946_v56 }
 0x341   : > { %2056 = vmatmul.bf16.gmra.mxu2 %v1940_v8  ;;  %2091 = vmatmul.bf16.gmra.mxu3 %v1947_v5 }
 0x351   : > { %2096 = vmatmul.bf16.gmra.mxu3 %v1948_v52 }
 0x361   : > { %2101 = vmatmul.bf16.gmra.mxu3 %v1949_v15  ;;  %v2646_v15 = vld [vmem:[%s3116_s26 + $0xa8] sm:$0xff] }
 0x364   : > { %v2027_v61 = vpop.f32.mrf.mxu2  ;;  %v2062_v28 = vpop.f32.mrf.mxu3 }
 0x365   : > { %v2028_v1 = vadd.f32 %v4325_v57, %v2027_v61  ;;  %v2063_v58 = vadd.f32 %v4325_v57, %v2062_v28 }
 0x367   : > { %v2107_v6 = vadd.f32 %v2631_v36, %v2028_v1  ;;  %v2121_v55 = vadd.f32 %v2632_v44, %v2063_v58 }
 0x369   : > { %2139 = vst [vmem:[%s4333_s15] sm:$0xff] %v2107_v6  ;;  %v2647_v6 = vld [vmem:[%s3116_s26 + $0x40] sm:$0xff] }
 0x36a   : > { %2153 = vst [vmem:[%s4333_s15 + $0x70] sm:$0xff] %v2121_v55  ;;  %v2648_v55 = vld [vmem:[%s3116_s26 + $0xb0] sm:$0xff] }
 0x36c   : > { %v2029_v45 = vpop.f32.mrf.mxu2  ;;  %v2064_v38 = vpop.f32.mrf.mxu3 }
 0x36d   : > { %v2030_v22 = vadd.f32 %v4325_v57, %v2029_v45  ;;  %v2065_v10 = vadd.f32 %v4325_v57, %v2064_v38 }
 0x36f   : > { %v2108_v26 = vadd.f32 %v2633_v11, %v2030_v22  ;;  %v2122_v62 = vadd.f32 %v2634_v16, %v2065_v10 }
 0x371   : > { %2140 = vst [vmem:[%s4333_s15 + $0x8] sm:$0xff] %v2108_v26  ;;  %v2649_v26 = vld [vmem:[%s3116_s26 + $0x48] sm:$0xff] }
 0x372   : > { %2154 = vst [vmem:[%s4333_s15 + $0x78] sm:$0xff] %v2122_v62  ;;  %v2650_v62 = vld [vmem:[%s3116_s26 + $0xb8] sm:$0xff] }
 0x374   : > { %v2032_v25 = vpop.f32.mrf.mxu2  ;;  %v2067_v49 = vpop.f32.mrf.mxu3 }
 0x375   : > { %v2033_v12 = vadd.f32 %v4325_v57, %v2032_v25  ;;  %v2068_v30 = vadd.f32 %v4325_v57, %v2067_v49 }
 0x377   : > { %v2109_v31 = vadd.f32 %v2635_v32, %v2033_v12  ;;  %v2123_v19 = vadd.f32 %v2636_v47, %v2068_v30 }
 0x379   : > { %2141 = vst [vmem:[%s4333_s15 + $0x10] sm:$0xff] %v2109_v31  ;;  %v2651_v31 = vld [vmem:[%s3116_s26 + $0x50] sm:$0xff] }
 0x37a   : > { %2155 = vst [vmem:[%s4333_s15 + $0x80] sm:$0xff] %v2123_v19  ;;  %v2652_v19 = vld [vmem:[%s3116_s26 + $0xc0] sm:$0xff] }
 0x37c   : > { %v2034_v24 = vpop.f32.mrf.mxu2  ;;  %v2069_v13 = vpop.f32.mrf.mxu3 }
 0x37d   : > { %v2035_v4 = vadd.f32 %v4325_v57, %v2034_v24  ;;  %v2070_v46 = vadd.f32 %v4325_v57, %v2069_v13 }
 0x37f   : > { %v2110_v48 = vadd.f32 %v2637_v60, %v2035_v4  ;;  %v2124_v2 = vadd.f32 %v2638_v59, %v2070_v46 }
 0x381   : > { %2142 = vst [vmem:[%s4333_s15 + $0x18] sm:$0xff] %v2110_v48  ;;  %v2653_v48 = vld [vmem:[%s3116_s26 + $0x58] sm:$0xff] }
 0x382   : > { %2156 = vst [vmem:[%s4333_s15 + $0x88] sm:$0xff] %v2124_v2  ;;  %v2654_v2 = vld [vmem:[%s3116_s26 + $0xc8] sm:$0xff] }
 0x384   : > { %v2037_v51 = vpop.f32.mrf.mxu2  ;;  %v2072_v18 = vpop.f32.mrf.mxu3 }
 0x385   : > { %v2038_v35 = vadd.f32 %v4325_v57, %v2037_v51  ;;  %v2073_v29 = vadd.f32 %v4325_v57, %v2072_v18 }
 0x387   : > { %v2111_v41 = vadd.f32 %v2639_v50, %v2038_v35  ;;  %v2125_v40 = vadd.f32 %v2640_v23, %v2073_v29 }
 0x389   : > { %2143 = vst [vmem:[%s4333_s15 + $0x20] sm:$0xff] %v2111_v41  ;;  %v2655_v41 = vld [vmem:[%s3116_s26 + $0x60] sm:$0xff] }
 0x38a   : > { %2157 = vst [vmem:[%s4333_s15 + $0x90] sm:$0xff] %v2125_v40  ;;  %v2656_v40 = vld [vmem:[%s3116_s26 + $0xd0] sm:$0xff] }
 0x38c   : > { %v2039_v3 = vpop.f32.mrf.mxu2  ;;  %v2074_v53 = vpop.f32.mrf.mxu3 }
 0x38d   : > { %v2040_v34 = vadd.f32 %v4325_v57, %v2039_v3  ;;  %v2075_v63 = vadd.f32 %v4325_v57, %v2074_v53 }
 0x38f   : > { %v2112_v9 = vadd.f32 %v2641_v33, %v2040_v34  ;;  %v2126_v20 = vadd.f32 %v2642_v7, %v2075_v63 }
 0x391   : > { %2144 = vst [vmem:[%s4333_s15 + $0x28] sm:$0xff] %v2112_v9  ;;  %v2657_v9 = vld [vmem:[%s3116_s26 + $0x68] sm:$0xff] }
 0x392   : > { %2158 = vst [vmem:[%s4333_s15 + $0x98] sm:$0xff] %v2126_v20  ;;  %v2658_v20 = vld [vmem:[%s3116_s26 + $0xd8] sm:$0xff] }
 0x394   : > { %v2042_v43 = vpop.f32.mrf.mxu2  ;;  %v2077_v42 = vpop.f32.mrf.mxu3 }
 0x395   : > { %v2043_v56 = vadd.f32 %v4325_v57, %v2042_v43  ;;  %v2078_v21 = vadd.f32 %v4325_v57, %v2077_v42 }
 0x397   : > { %v2113_v39 = vadd.f32 %v2643_v17, %v2043_v56  ;;  %v2127_v8 = vadd.f32 %v2644_v0, %v2078_v21  ;;  %v2659_v21 = vld [vmem:[%s3116_s26 + $0xe0] sm:$0xff] }
 0x399   : > { %2145 = vst [vmem:[%s4333_s15 + $0x30] sm:$0xff] %v2113_v39 }
 0x39a   : > { %2159 = vst [vmem:[%s4333_s15 + $0xa0] sm:$0xff] %v2127_v8  ;;  %v2660_v8 = vld [vmem:[%s3116_s26 + $0xe8] sm:$0xff] }
 0x39c   : > { %v2044_v5 = vpop.f32.mrf.mxu2  ;;  %v2079_v27 = vpop.f32.mrf.mxu3 }
 0x39d   : > { %v2045_v54 = vadd.f32 %v4325_v57, %v2044_v5  ;;  %v2080_v52 = vadd.f32 %v4325_v57, %v2079_v27 }
 0x39f   : > { %v2114_v37 = vadd.f32 %v2645_v14, %v2045_v54  ;;  %v2128_v61 = vadd.f32 %v2646_v15, %v2080_v52  ;;  %v2661_v52 = vld [vmem:[%s3116_s26 + $0xf0] sm:$0xff] }
 0x3a1   : > { %2146 = vst [vmem:[%s4333_s15 + $0x38] sm:$0xff] %v2114_v37 }
 0x3a2   : > { %2160 = vst [vmem:[%s4333_s15 + $0xa8] sm:$0xff] %v2128_v61  ;;  %v2662_v61 = vld [vmem:[%s3116_s26 + $0xf8] sm:$0xff] }
 0x3a4   : > { %v2047_v28 = vpop.f32.mrf.mxu2  ;;  %v2082_v1 = vpop.f32.mrf.mxu3 }
 0x3a5   : > { %v2048_v58 = vadd.f32 %v4325_v57, %v2047_v28  ;;  %v2083_v36 = vadd.f32 %v4325_v57, %v2082_v1 }
 0x3a7   : > { %v2115_v44 = vadd.f32 %v2647_v6, %v2048_v58  ;;  %v2129_v45 = vadd.f32 %v2648_v55, %v2083_v36 }
 0x3a9   : > { %2147 = vst [vmem:[%s4333_s15 + $0x40] sm:$0xff] %v2115_v44 }
 0x3aa   : > { %2161 = vst [vmem:[%s4333_s15 + $0xb0] sm:$0xff] %v2129_v45 }
 0x3ac   : > { %v2049_v38 = vpop.f32.mrf.mxu2  ;;  %v2084_v22 = vpop.f32.mrf.mxu3 }
 0x3ad   : > { %v2050_v10 = vadd.f32 %v4325_v57, %v2049_v38  ;;  %v2085_v11 = vadd.f32 %v4325_v57, %v2084_v22 }
 0x3af   : > { %v2116_v16 = vadd.f32 %v2649_v26, %v2050_v10  ;;  %v2130_v25 = vadd.f32 %v2650_v62, %v2085_v11 }
 0x3b1   : > { %2148 = vst [vmem:[%s4333_s15 + $0x48] sm:$0xff] %v2116_v16 }
 0x3b2   : > { %2162 = vst [vmem:[%s4333_s15 + $0xb8] sm:$0xff] %v2130_v25 }
 0x3b4   : > { %v2052_v49 = vpop.f32.mrf.mxu2  ;;  %v2087_v12 = vpop.f32.mrf.mxu3 }
 0x3b5   : > { %v2053_v30 = vadd.f32 %v4325_v57, %v2052_v49  ;;  %v2088_v32 = vadd.f32 %v4325_v57, %v2087_v12 }
 0x3b7   : > { %v2117_v47 = vadd.f32 %v2651_v31, %v2053_v30  ;;  %v2131_v24 = vadd.f32 %v2652_v19, %v2088_v32 }
 0x3b9   : > { %2149 = vst [vmem:[%s4333_s15 + $0x50] sm:$0xff] %v2117_v47 }
 0x3ba   : > { %2163 = vst [vmem:[%s4333_s15 + $0xc0] sm:$0xff] %v2131_v24 }
 0x3bc   : > { %v2054_v13 = vpop.f32.mrf.mxu2  ;;  %v2089_v4 = vpop.f32.mrf.mxu3 }
 0x3bd   : > { %v2055_v46 = vadd.f32 %v4325_v57, %v2054_v13  ;;  %v2090_v60 = vadd.f32 %v4325_v57, %v2089_v4 }
 0x3bf   : > { %v2118_v59 = vadd.f32 %v2653_v48, %v2055_v46  ;;  %v2132_v51 = vadd.f32 %v2654_v2, %v2090_v60 }
 0x3c1   : > { %2150 = vst [vmem:[%s4333_s15 + $0x58] sm:$0xff] %v2118_v59 }
 0x3c2   : > { %2164 = vst [vmem:[%s4333_s15 + $0xc8] sm:$0xff] %v2132_v51 }
 0x3c4   : > { %v2057_v18 = vpop.f32.mrf.mxu2  ;;  %v2092_v35 = vpop.f32.mrf.mxu3 }
 0x3c5   : > { %v2058_v29 = vadd.f32 %v4325_v57, %v2057_v18  ;;  %v2093_v50 = vadd.f32 %v4325_v57, %v2092_v35 }
 0x3c7   : > { %v2119_v23 = vadd.f32 %v2655_v41, %v2058_v29  ;;  %v2133_v3 = vadd.f32 %v2656_v40, %v2093_v50 }
 0x3c9   : > { %2151 = vst [vmem:[%s4333_s15 + $0x60] sm:$0xff] %v2119_v23 }
 0x3ca   : > { %2165 = vst [vmem:[%s4333_s15 + $0xd0] sm:$0xff] %v2133_v3 }
 0x3cc   : > { %v2059_v53 = vpop.f32.mrf.mxu2  ;;  %v2094_v34 = vpop.f32.mrf.mxu3 }
 0x3cd   : > { %v2060_v63 = vadd.f32 %v4325_v57, %v2059_v53  ;;  %v2095_v33 = vadd.f32 %v4325_v57, %v2094_v34 }
 0x3cf   : > { %v2120_v7 = vadd.f32 %v2657_v9, %v2060_v63  ;;  %v2134_v43 = vadd.f32 %v2658_v20, %v2095_v33 }
 0x3d1   : > { %2152 = vst [vmem:[%s4333_s15 + $0x68] sm:$0xff] %v2120_v7 }
 0x3d2   : > { %2166 = vst [vmem:[%s4333_s15 + $0xd8] sm:$0xff] %v2134_v43 }
 0x3d4   : > { %v2097_v42 = vpop.f32.mrf.mxu3 }
 0x3d5   : > { %v2098_v56 = vadd.f32 %v4325_v57, %v2097_v42 }
 0x3d7   : > { %v2135_v17 = vadd.f32 %v2659_v21, %v2098_v56 }
 0x3d9   : > { %2167 = vst [vmem:[%s4333_s15 + $0xe0] sm:$0xff] %v2135_v17 }
 0x3dc   : > { %v2099_v39 = vpop.f32.mrf.mxu3 }
 0x3dd   : > { %v2100_v0 = vadd.f32 %v4325_v57, %v2099_v39 }
 0x3df   : > { %v2136_v5 = vadd.f32 %v2660_v8, %v2100_v0 }
 0x3e1   : > { %2168 = vst [vmem:[%s4333_s15 + $0xe8] sm:$0xff] %v2136_v5 }
 0x3e4   : > { %v2102_v27 = vpop.f32.mrf.mxu3 }
 0x3e5   : > { %v2103_v54 = vadd.f32 %v4325_v57, %v2102_v27 }
 0x3e7   : > { %v2137_v14 = vadd.f32 %v2661_v52, %v2103_v54 }
 0x3e9   : > { %2169 = vst [vmem:[%s4333_s15 + $0xf0] sm:$0xff] %v2137_v14 }
 0x3ec   : > { %v2104_v37 = vpop.f32.mrf.mxu3 }
 0x3ed   : > { %v2105_v15 = vadd.f32 %v4325_v57, %v2104_v37 }
 0x3ef   : > { %v2138_v28 = vadd.f32 %v2662_v61, %v2105_v15 }
 0x3f1   : > { %2170 = vst [vmem:[%s4333_s15 + $0xf8] sm:$0xff] %v2138_v28 }
 0x3f2   : > { %2870 = shalt.err (!%p2867_p9)
}
 0x3f3   : > { %s2935_s14 = smov 128   ;;  %s2936_s26 = smov 8  }
 0x3f4   : > { %2532 = dma.vmem_to_hbm [thread:$0]  (%p3076_p13), %s2185_s27, 4096, %s2187_s23, %s2172_s22, %s2935_s14, %s2935_s14, %s2936_s26  }
 0x3f5 PF: > { %s2201_s15 = sand.u32 1, %s2909_s30   ;;  %p4627_p10 = scmp.ge.s32.totalorder %s2921_s12, 2 }
 0x3f6   : > { %s2202_s5 = scalar_lea.sflag [#allocation5], %s2201_s15 }
 0x3f7   : > { %p2555_p11 = pnand %p4627_p10, %p3081_p4 }
 0x3f9   : > { %p2556_p0 = pneg %p2555_p11 }
 0x3fb   : > { %2904 = dma.done.wait (%p2556_p0), %s2202_s5, 4096  }
 0x3fc   : > { %2906 = vsyncadd (%p2556_p0), %s2202_s5, 4294963200  ;;  %p25_p2 = scmp.ge.s32.totalorder %s3056_s21, 4   ;;  %s4628_s30 = smov %s2913_s10 }
 0x3fd   : > { %s4629_s10 = smov %s2917_s11  ;;  %s4630_s11 = smov %s3068_s24 }
 0x3fe   : > { %s4631_s12 = smov %s3056_s21  ;;  %27 = sbr.rel (!%p25_p2) target bundleno = 12 (0xc), region = 124 }
 0x403   :  { %2208 = vsyncpa [#allocation4], 1 }
 0x404   :  { %2210 = vsyncpa [#allocation4 + $0x1], 1 }
 0x405   :  { %2211 = vsyncpa [#allocation7], 1 }
 0x406   :  { %2212 = vsyncpa [#allocation10], 1 }
 0x407   :  { %2213 = vsyncpa [#allocation13], 1 }
 0x408   :  { %2214 = vsyncpa [#allocation5], 1 }
 0x409   :  { %2216 = vsyncpa [#allocation5 + $0x1], 1 }

</bundles_post_ra>
